<compile_context>
chip_gen: v5e
topology: v5e:2x2
jax: 0.10.0
libtpu: 0.0.40
codegen_flags: <defaults>
</compile_context>

<pallas_src>
import functools

import jax
import jax.numpy as jnp
from jax.experimental import pallas as pl
from jax.experimental.pallas import tpu as pltpu

# ----------------------------- Config ---------------------------------------
VOCAB      = 64           # Config.vocab_size
VOCAB_PAD  = 128          # lane-dense logits store (sliced back to VOCAB)
BLOCK_SIZE = 8            # Config.block_size  (T)
N_EMBED    = 32           # Config.n_embed     (C)
N_HEADS    = 4
HEAD_SIZE  = N_EMBED // N_HEADS
N_LAYERS   = 2            # Config.n_layers (weights shared, see note above)
FF_HIDDEN  = 4 * N_EMBED
LN_EPS     = 1e-5

# Sequences packed per grid step: 32 * 8 = 256 activation rows per block, which
# fills the MXU in M on v6e/v7x (>=128 suffices on v5e).  Multiple blocks give a
# 'parallel' grid axis for megacore (v7x) at larger batch sizes.
MAX_SEQ_PER_BLOCK = 32


# ----------------------------- Kernel ---------------------------------------
def _layernorm(v, g, b):
    mu = jnp.mean(v, axis=-1, keepdims=True)
    var = jnp.mean((v - mu) ** 2, axis=-1, keepdims=True)
    return (v - mu) * jax.lax.rsqrt(var + LN_EPS) * g + b


def pottergpt_kernel(tok_ref, pos_ref,
                     ln1g, ln1b, wq_h, wk_h, wv_h, wo_h, bo,
                     ln2g, ln2b, w1, b1, w2, b2,
                     lnfg, lnfb, wlm, blm,
                     out_ref, *, spb):
    T = BLOCK_SIZE
    R = spb * T
    f32 = jnp.float32

    # ---- hoist all parameter loads out of the (weight-shared) layer loop ----
    ln1g_v, ln1b_v = ln1g[...], ln1b[...]
    ln2g_v, ln2b_v = ln2g[...], ln2b[...]
    lnfg_v, lnfb_v = lnfg[...], lnfb[...]
    bo_v, b1_v, b2_v, blm_v = bo[...], b1[...], b2[...], blm[...]
    w1_v, w2_v, wlm_v = w1[...], w2[...], wlm[...]
    wq_heads = [wq_h[hd] for hd in range(N_HEADS)]   # each (C, hs)
    wk_heads = [wk_h[hd] for hd in range(N_HEADS)]   # each (C, hs)
    wv_heads = [wv_h[hd] for hd in range(N_HEADS)]   # each (C, hs)
    wo_heads = [wo_h[hd] for hd in range(N_HEADS)]   # each (hs, C)

    # ---- embeddings: tok (R, C) + pos broadcast over the spb sequences ----
    x = tok_ref[...].astype(f32)
    pos = pos_ref[...].astype(f32)
    x = (x.reshape(spb, T, N_EMBED) + pos[None, :, :]).reshape(R, N_EMBED)

    # additive causal mask, built once (2-D iota as required on TPU)
    row = jax.lax.broadcasted_iota(jnp.int32, (T, T), 0)
    col = jax.lax.broadcasted_iota(jnp.int32, (T, T), 1)
    causal_add = jnp.where(row >= col, f32(0.0), f32(-1e30))[None, :, :]  # (1,T,T)
    scale = f32(HEAD_SIZE ** -0.5)

    for _ in range(N_LAYERS):  # SAME (shared) block weights each iteration
        # --- causal multi-head self-attention (pre-LN) ---
        h = _layernorm(x, ln1g_v, ln1b_v)                  # (R, C)
        attn = jnp.zeros((R, N_EMBED), f32)
        for hd in range(N_HEADS):
            # per-head projections: full-row (M=R) matmuls, no lane slicing
            qh = jnp.dot(h, wq_heads[hd], preferred_element_type=f32)
            kh = jnp.dot(h, wk_heads[hd], preferred_element_type=f32)
            vh = jnp.dot(h, wv_heads[hd], preferred_element_type=f32)
            qh = qh.reshape(spb, T, HEAD_SIZE)
            kh = kh.reshape(spb, T, HEAD_SIZE)
            vh = vh.reshape(spb, T, HEAD_SIZE)
            # scores batched over sequences (flash-style einsum)
            s = jnp.einsum('bqd,bkd->bqk', qh, kh,
                           preferred_element_type=f32) * scale
            s = s + causal_add
            s = s - jnp.max(s, axis=-1, keepdims=True)
            p = jnp.exp(s)
            p = p * pl.reciprocal(jnp.sum(p, axis=-1, keepdims=True),
                                  approx=True)
            oh = jnp.einsum('bqk,bkd->bqd', p, vh,
                            preferred_element_type=f32).reshape(R, HEAD_SIZE)
            # concat(heads) @ Wo == sum_h  oh @ Wo[h]
            attn = attn + jnp.dot(oh, wo_heads[hd], preferred_element_type=f32)
        x = x + attn + bo_v

        # --- feed-forward (pre-LN) ---
        h2 = _layernorm(x, ln2g_v, ln2b_v)
        ff = jnp.maximum(
            jnp.dot(h2, w1_v, preferred_element_type=f32) + b1_v, 0.0)
        x = x + jnp.dot(ff, w2_v, preferred_element_type=f32) + b2_v

    # --- final LayerNorm + lm_head (lane-dense, vocab padded to 128) ---
    xf = _layernorm(x, lnfg_v, lnfb_v)
    logits = jnp.dot(xf, wlm_v, preferred_element_type=f32) + blm_v
    out_ref[...] = logits


# ----------------------------- Wrapper ---------------------------------------
@jax.jit
def pottergpt_forward(idx, params):
    B, T = idx.shape
    spb = min(B, MAX_SEQ_PER_BLOCK)
    n_blocks = -(-B // spb)
    B_pad = n_blocks * spb
    rows_per_block = spb * T

    # Glue: embedding gather stays in plain JAX; add + transformer + head run
    # inside the Pallas kernel.  (For very large B the gather could move into
    # the kernel via PrefetchScalarGridSpec + pl.Element row index_map.)
    tok = params["tok_table"][idx]                          # (B, T, C)
    if B_pad != B:
        tok = jnp.pad(tok, ((0, B_pad - B), (0, 0), (0, 0)))
    tok_flat = tok.reshape(B_pad * T, N_EMBED)              # (rows, C)
    pos = params["pos_table"][:T]                           # (T, C)

    # Pre-split per-head weights (zero kernel-time cost) + pad lm_head to 128.
    wq_h = params["wq"].reshape(N_EMBED, N_HEADS, HEAD_SIZE).transpose(1, 0, 2)
    wk_h = params["wk"].reshape(N_EMBED, N_HEADS, HEAD_SIZE).transpose(1, 0, 2)
    wv_h = params["wv"].reshape(N_EMBED, N_HEADS, HEAD_SIZE).transpose(1, 0, 2)
    wo_h = params["wo"].reshape(N_HEADS, HEAD_SIZE, N_EMBED)
    wlm_p = jnp.pad(params["wlm"], ((0, 0), (0, VOCAB_PAD - VOCAB)))
    blm_p = jnp.pad(params["blm"], ((0, 0), (0, VOCAB_PAD - VOCAB)))

    weights = [params["ln1_g"], params["ln1_b"], wq_h, wk_h, wv_h, wo_h,
               params["bo"], params["ln2_g"], params["ln2_b"],
               params["w1"], params["b1"], params["w2"], params["b2"],
               params["lnf_g"], params["lnf_b"], wlm_p, blm_p]

    in_specs = [
        pl.BlockSpec((rows_per_block, N_EMBED), lambda i: (i, 0)),  # tok rows
        pl.BlockSpec((T, N_EMBED), lambda i: (0, 0)),               # pos emb
    ] + [
        pl.BlockSpec(w.shape, lambda i, n=w.ndim: (0,) * n)         # full weights
        for w in weights
    ]

    out_flat = pl.pallas_call(
        functools.partial(pottergpt_kernel, spb=spb),
        out_shape=jax.ShapeDtypeStruct((B_pad * T, VOCAB_PAD), jnp.float32),
        grid=(n_blocks,),
        in_specs=in_specs,
        out_specs=pl.BlockSpec((rows_per_block, VOCAB_PAD), lambda i: (i, 0)),
        compiler_params=pltpu.CompilerParams(
            dimension_semantics=("parallel",)),
    )(tok_flat, pos, *weights)

    # slice off batch padding and padded logit columns
    return out_flat.reshape(B_pad, T, VOCAB_PAD)[:B, :, :VOCAB]


# ----------------------------- Params / reference -----------------------------
def init_params(key):
    ks = jax.random.split(key, 12)
    n = lambda k, shape, s=0.02: (s * jax.random.normal(k, shape)).astype(jnp.float32)
    p = {
        "tok_table": n(ks[0], (VOCAB, N_EMBED), 1.0),
        "pos_table": n(ks[1], (BLOCK_SIZE, N_EMBED), 1.0),
        "ln1_g": jnp.ones((1, N_EMBED), jnp.float32),
        "ln1_b": jnp.zeros((1, N_EMBED), jnp.float32),
        "wq": n(ks[2], (N_EMBED, N_EMBED)),
        "wk": n(ks[3], (N_EMBED, N_EMBED)),
        "wv": n(ks[4], (N_EMBED, N_EMBED)),
        "wo": n(ks[5], (N_EMBED, N_EMBED)),
        "bo": jnp.zeros((1, N_EMBED), jnp.float32),
        "ln2_g": jnp.ones((1, N_EMBED), jnp.float32),
        "ln2_b": jnp.zeros((1, N_EMBED), jnp.float32),
        "w1": n(ks[6], (N_EMBED, FF_HIDDEN)),
        "b1": jnp.zeros((1, FF_HIDDEN), jnp.float32),
        "w2": n(ks[7], (FF_HIDDEN, N_EMBED)),
        "b2": jnp.zeros((1, N_EMBED), jnp.float32),
        "lnf_g": jnp.ones((1, N_EMBED), jnp.float32),
        "lnf_b": jnp.zeros((1, N_EMBED), jnp.float32),
        "wlm": n(ks[8], (N_EMBED, VOCAB)),
        "blm": jnp.zeros((1, VOCAB), jnp.float32),
    }
    return p


def reference_forward(idx, p):
    B, T = idx.shape
    x = p["tok_table"][idx] + p["pos_table"][:T]

    def ln(v, g, b):
        mu = v.mean(-1, keepdims=True)
        var = ((v - mu) ** 2).mean(-1, keepdims=True)
        return (v - mu) / jnp.sqrt(var + LN_EPS) * g + b

    causal = jnp.tril(jnp.ones((T, T), bool))
    for _ in range(N_LAYERS):
        h = ln(x, p["ln1_g"], p["ln1_b"])
        q = (h @ p["wq"]).reshape(B, T, N_HEADS, HEAD_SIZE).transpose(0, 2, 1, 3)
        k = (h @ p["wk"]).reshape(B, T, N_HEADS, HEAD_SIZE).transpose(0, 2, 1, 3)
        v = (h @ p["wv"]).reshape(B, T, N_HEADS, HEAD_SIZE).transpose(0, 2, 1, 3)
        s = (q @ k.transpose(0, 1, 3, 2)) * (HEAD_SIZE ** -0.5)
        s = jnp.where(causal, s, -1e30)
        att = jax.nn.softmax(s, axis=-1)
        o = (att @ v).transpose(0, 2, 1, 3).reshape(B, T, N_EMBED)
        x = x + o @ p["wo"] + p["bo"]
        h2 = ln(x, p["ln2_g"], p["ln2_b"])
        f = jax.nn.relu(h2 @ p["w1"] + p["b1"])
        x = x + f @ p["w2"] + p["b2"]
    xf = ln(x, p["lnf_g"], p["lnf_b"])
    return xf @ p["wlm"] + p["blm"]


# ----------------------------- Main -------------------------------------------
if __name__ == "__main__":
    key = jax.random.PRNGKey(0)
    k_idx, k_params = jax.random.split(key)

    B, T = 2, BLOCK_SIZE
    idx = jax.random.randint(k_idx, (B, T), 0, VOCAB, dtype=jnp.int32)
    params = init_params(k_params)

    logits = pottergpt_forward(idx, params)
    logits = jax.block_until_ready(logits)
    assert logits.shape == (B, T, VOCAB), logits.shape

    ref = reference_forward(idx, params)
    assert jnp.allclose(logits, ref, rtol=1e-4, atol=1e-4), \
        float(jnp.max(jnp.abs(logits - ref)))

    # TODO(synk): generate() (autoregressive multinomial sampling loop) is host-side
    # control flow and is not implemented as a kernel.
    print("KERNEL_OK")
</pallas_src>

<mosaic_0001>
module attributes {stable_mosaic.version = 11 : i64} {
  func.func @pottergpt_kernel(%arg0: i32, %arg1: memref<16x32xf32, #tpu.memory_space<vmem>>, %arg2: memref<8x32xf32, #tpu.memory_space<vmem>>, %arg3: memref<1x32xf32, #tpu.memory_space<vmem>>, %arg4: memref<1x32xf32, #tpu.memory_space<vmem>>, %arg5: memref<4x32x8xf32, #tpu.memory_space<vmem>>, %arg6: memref<4x32x8xf32, #tpu.memory_space<vmem>>, %arg7: memref<4x32x8xf32, #tpu.memory_space<vmem>>, %arg8: memref<4x8x32xf32, #tpu.memory_space<vmem>>, %arg9: memref<1x32xf32, #tpu.memory_space<vmem>>, %arg10: memref<1x32xf32, #tpu.memory_space<vmem>>, %arg11: memref<1x32xf32, #tpu.memory_space<vmem>>, %arg12: memref<32x128xf32, #tpu.memory_space<vmem>>, %arg13: memref<1x128xf32, #tpu.memory_space<vmem>>, %arg14: memref<128x32xf32, #tpu.memory_space<vmem>>, %arg15: memref<1x32xf32, #tpu.memory_space<vmem>>, %arg16: memref<1x32xf32, #tpu.memory_space<vmem>>, %arg17: memref<1x32xf32, #tpu.memory_space<vmem>>, %arg18: memref<32x128xf32, #tpu.memory_space<vmem>>, %arg19: memref<1x128xf32, #tpu.memory_space<vmem>>, %arg20: memref<16x128xf32, #tpu.memory_space<vmem>>) attributes {dimension_semantics = [#tpu.dimension_semantics<parallel>], iteration_bounds = array<i64: 1>, scalar_prefetch = 0 : i64, scratch_operands = 0 : i64, tpu.core_type = #tpu.core_type<tc>, window_params = [{transform_indices = @transform_0, window_bounds = array<i64: 16, 32>}, {pipeline_mode = #tpu.pipeline_mode<synchronous>, transform_indices = @transform_1, window_bounds = array<i64: 8, 32>}, {pipeline_mode = #tpu.pipeline_mode<synchronous>, transform_indices = @transform_2, window_bounds = array<i64: 1, 32>}, {pipeline_mode = #tpu.pipeline_mode<synchronous>, transform_indices = @transform_3, window_bounds = array<i64: 1, 32>}, {pipeline_mode = #tpu.pipeline_mode<synchronous>, transform_indices = @transform_4, window_bounds = array<i64: 4, 32, 8>}, {pipeline_mode = #tpu.pipeline_mode<synchronous>, transform_indices = @transform_5, window_bounds = array<i64: 4, 32, 8>}, {pipeline_mode = #tpu.pipeline_mode<synchronous>, transform_indices = @transform_6, window_bounds = array<i64: 4, 32, 8>}, {pipeline_mode = #tpu.pipeline_mode<synchronous>, transform_indices = @transform_7, window_bounds = array<i64: 4, 8, 32>}, {pipeline_mode = #tpu.pipeline_mode<synchronous>, transform_indices = @transform_8, window_bounds = array<i64: 1, 32>}, {pipeline_mode = #tpu.pipeline_mode<synchronous>, transform_indices = @transform_9, window_bounds = array<i64: 1, 32>}, {pipeline_mode = #tpu.pipeline_mode<synchronous>, transform_indices = @transform_10, window_bounds = array<i64: 1, 32>}, {pipeline_mode = #tpu.pipeline_mode<synchronous>, transform_indices = @transform_11, window_bounds = array<i64: 32, 128>}, {pipeline_mode = #tpu.pipeline_mode<synchronous>, transform_indices = @transform_12, window_bounds = array<i64: 1, 128>}, {pipeline_mode = #tpu.pipeline_mode<synchronous>, transform_indices = @transform_13, window_bounds = array<i64: 128, 32>}, {pipeline_mode = #tpu.pipeline_mode<synchronous>, transform_indices = @transform_14, window_bounds = array<i64: 1, 32>}, {pipeline_mode = #tpu.pipeline_mode<synchronous>, transform_indices = @transform_15, window_bounds = array<i64: 1, 32>}, {pipeline_mode = #tpu.pipeline_mode<synchronous>, transform_indices = @transform_16, window_bounds = array<i64: 1, 32>}, {pipeline_mode = #tpu.pipeline_mode<synchronous>, transform_indices = @transform_17, window_bounds = array<i64: 32, 128>}, {pipeline_mode = #tpu.pipeline_mode<synchronous>, transform_indices = @transform_18, window_bounds = array<i64: 1, 128>}, {transform_indices = @transform_19, window_bounds = array<i64: 16, 128>}]} {
    %c0 = arith.constant 0 : index
    %c0_0 = arith.constant 0 : index
    %0 = vector.load %arg3[%c0, %c0_0] : memref<1x32xf32, #tpu.memory_space<vmem>>, vector<1x32xf32>
    %c0_1 = arith.constant 0 : index
    %c0_2 = arith.constant 0 : index
    %1 = vector.load %arg4[%c0_1, %c0_2] : memref<1x32xf32, #tpu.memory_space<vmem>>, vector<1x32xf32>
    %c0_3 = arith.constant 0 : index
    %c0_4 = arith.constant 0 : index
    %2 = vector.load %arg10[%c0_3, %c0_4] : memref<1x32xf32, #tpu.memory_space<vmem>>, vector<1x32xf32>
    %c0_5 = arith.constant 0 : index
    %c0_6 = arith.constant 0 : index
    %3 = vector.load %arg11[%c0_5, %c0_6] : memref<1x32xf32, #tpu.memory_space<vmem>>, vector<1x32xf32>
    %c0_7 = arith.constant 0 : index
    %c0_8 = arith.constant 0 : index
    %4 = vector.load %arg16[%c0_7, %c0_8] : memref<1x32xf32, #tpu.memory_space<vmem>>, vector<1x32xf32>
    %c0_9 = arith.constant 0 : index
    %c0_10 = arith.constant 0 : index
    %5 = vector.load %arg17[%c0_9, %c0_10] : memref<1x32xf32, #tpu.memory_space<vmem>>, vector<1x32xf32>
    %c0_11 = arith.constant 0 : index
    %c0_12 = arith.constant 0 : index
    %6 = vector.load %arg9[%c0_11, %c0_12] : memref<1x32xf32, #tpu.memory_space<vmem>>, vector<1x32xf32>
    %c0_13 = arith.constant 0 : index
    %c0_14 = arith.constant 0 : index
    %7 = vector.load %arg13[%c0_13, %c0_14] : memref<1x128xf32, #tpu.memory_space<vmem>>, vector<1x128xf32>
    %c0_15 = arith.constant 0 : index
    %c0_16 = arith.constant 0 : index
    %8 = vector.load %arg15[%c0_15, %c0_16] : memref<1x32xf32, #tpu.memory_space<vmem>>, vector<1x32xf32>
    %c0_17 = arith.constant 0 : index
    %c0_18 = arith.constant 0 : index
    %9 = vector.load %arg19[%c0_17, %c0_18] : memref<1x128xf32, #tpu.memory_space<vmem>>, vector<1x128xf32>
    %c0_19 = arith.constant 0 : index
    %c0_20 = arith.constant 0 : index
    %10 = vector.load %arg12[%c0_19, %c0_20] : memref<32x128xf32, #tpu.memory_space<vmem>>, vector<32x128xf32>
    %c0_21 = arith.constant 0 : index
    %c0_22 = arith.constant 0 : index
    %11 = vector.load %arg14[%c0_21, %c0_22] : memref<128x32xf32, #tpu.memory_space<vmem>>, vector<128x32xf32>
    %c0_23 = arith.constant 0 : index
    %c0_24 = arith.constant 0 : index
    %12 = vector.load %arg18[%c0_23, %c0_24] : memref<32x128xf32, #tpu.memory_space<vmem>>, vector<32x128xf32>
    %c0_25 = arith.constant 0 : index
    %c0_26 = arith.constant 0 : index
    %c0_27 = arith.constant 0 : index
    %13 = vector.load %arg5[%c0_25, %c0_26, %c0_27] : memref<4x32x8xf32, #tpu.memory_space<vmem>>, vector<1x32x8xf32>
    %14 = vector.shape_cast %13 : vector<1x32x8xf32> to vector<32x8xf32>
    %c1 = arith.constant 1 : index
    %c0_28 = arith.constant 0 : index
    %c0_29 = arith.constant 0 : index
    %15 = vector.load %arg5[%c1, %c0_28, %c0_29] : memref<4x32x8xf32, #tpu.memory_space<vmem>>, vector<1x32x8xf32>
    %16 = vector.shape_cast %15 : vector<1x32x8xf32> to vector<32x8xf32>
    %c2 = arith.constant 2 : index
    %c0_30 = arith.constant 0 : index
    %c0_31 = arith.constant 0 : index
    %17 = vector.load %arg5[%c2, %c0_30, %c0_31] : memref<4x32x8xf32, #tpu.memory_space<vmem>>, vector<1x32x8xf32>
    %18 = vector.shape_cast %17 : vector<1x32x8xf32> to vector<32x8xf32>
    %c3 = arith.constant 3 : index
    %c0_32 = arith.constant 0 : index
    %c0_33 = arith.constant 0 : index
    %19 = vector.load %arg5[%c3, %c0_32, %c0_33] : memref<4x32x8xf32, #tpu.memory_space<vmem>>, vector<1x32x8xf32>
    %20 = vector.shape_cast %19 : vector<1x32x8xf32> to vector<32x8xf32>
    %c0_34 = arith.constant 0 : index
    %c0_35 = arith.constant 0 : index
    %c0_36 = arith.constant 0 : index
    %21 = vector.load %arg6[%c0_34, %c0_35, %c0_36] : memref<4x32x8xf32, #tpu.memory_space<vmem>>, vector<1x32x8xf32>
    %22 = vector.shape_cast %21 : vector<1x32x8xf32> to vector<32x8xf32>
    %c1_37 = arith.constant 1 : index
    %c0_38 = arith.constant 0 : index
    %c0_39 = arith.constant 0 : index
    %23 = vector.load %arg6[%c1_37, %c0_38, %c0_39] : memref<4x32x8xf32, #tpu.memory_space<vmem>>, vector<1x32x8xf32>
    %24 = vector.shape_cast %23 : vector<1x32x8xf32> to vector<32x8xf32>
    %c2_40 = arith.constant 2 : index
    %c0_41 = arith.constant 0 : index
    %c0_42 = arith.constant 0 : index
    %25 = vector.load %arg6[%c2_40, %c0_41, %c0_42] : memref<4x32x8xf32, #tpu.memory_space<vmem>>, vector<1x32x8xf32>
    %26 = vector.shape_cast %25 : vector<1x32x8xf32> to vector<32x8xf32>
    %c3_43 = arith.constant 3 : index
    %c0_44 = arith.constant 0 : index
    %c0_45 = arith.constant 0 : index
    %27 = vector.load %arg6[%c3_43, %c0_44, %c0_45] : memref<4x32x8xf32, #tpu.memory_space<vmem>>, vector<1x32x8xf32>
    %28 = vector.shape_cast %27 : vector<1x32x8xf32> to vector<32x8xf32>
    %c0_46 = arith.constant 0 : index
    %c0_47 = arith.constant 0 : index
    %c0_48 = arith.constant 0 : index
    %29 = vector.load %arg7[%c0_46, %c0_47, %c0_48] : memref<4x32x8xf32, #tpu.memory_space<vmem>>, vector<1x32x8xf32>
    %30 = vector.shape_cast %29 : vector<1x32x8xf32> to vector<32x8xf32>
    %c1_49 = arith.constant 1 : index
    %c0_50 = arith.constant 0 : index
    %c0_51 = arith.constant 0 : index
    %31 = vector.load %arg7[%c1_49, %c0_50, %c0_51] : memref<4x32x8xf32, #tpu.memory_space<vmem>>, vector<1x32x8xf32>
    %32 = vector.shape_cast %31 : vector<1x32x8xf32> to vector<32x8xf32>
    %c2_52 = arith.constant 2 : index
    %c0_53 = arith.constant 0 : index
    %c0_54 = arith.constant 0 : index
    %33 = vector.load %arg7[%c2_52, %c0_53, %c0_54] : memref<4x32x8xf32, #tpu.memory_space<vmem>>, vector<1x32x8xf32>
    %34 = vector.shape_cast %33 : vector<1x32x8xf32> to vector<32x8xf32>
    %c3_55 = arith.constant 3 : index
    %c0_56 = arith.constant 0 : index
    %c0_57 = arith.constant 0 : index
    %35 = vector.load %arg7[%c3_55, %c0_56, %c0_57] : memref<4x32x8xf32, #tpu.memory_space<vmem>>, vector<1x32x8xf32>
    %36 = vector.shape_cast %35 : vector<1x32x8xf32> to vector<32x8xf32>
    %c0_58 = arith.constant 0 : index
    %c0_59 = arith.constant 0 : index
    %c0_60 = arith.constant 0 : index
    %37 = vector.load %arg8[%c0_58, %c0_59, %c0_60] : memref<4x8x32xf32, #tpu.memory_space<vmem>>, vector<1x8x32xf32>
    %38 = vector.shape_cast %37 : vector<1x8x32xf32> to vector<8x32xf32>
    %c1_61 = arith.constant 1 : index
    %c0_62 = arith.constant 0 : index
    %c0_63 = arith.constant 0 : index
    %39 = vector.load %arg8[%c1_61, %c0_62, %c0_63] : memref<4x8x32xf32, #tpu.memory_space<vmem>>, vector<1x8x32xf32>
    %40 = vector.shape_cast %39 : vector<1x8x32xf32> to vector<8x32xf32>
    %c2_64 = arith.constant 2 : index
    %c0_65 = arith.constant 0 : index
    %c0_66 = arith.constant 0 : index
    %41 = vector.load %arg8[%c2_64, %c0_65, %c0_66] : memref<4x8x32xf32, #tpu.memory_space<vmem>>, vector<1x8x32xf32>
    %42 = vector.shape_cast %41 : vector<1x8x32xf32> to vector<8x32xf32>
    %c3_67 = arith.constant 3 : index
    %c0_68 = arith.constant 0 : index
    %c0_69 = arith.constant 0 : index
    %43 = vector.load %arg8[%c3_67, %c0_68, %c0_69] : memref<4x8x32xf32, #tpu.memory_space<vmem>>, vector<1x8x32xf32>
    %44 = vector.shape_cast %43 : vector<1x8x32xf32> to vector<8x32xf32>
    %c0_70 = arith.constant 0 : index
    %c0_71 = arith.constant 0 : index
    %45 = vector.load %arg1[%c0_70, %c0_71] : memref<16x32xf32, #tpu.memory_space<vmem>>, vector<16x32xf32>
    %c0_72 = arith.constant 0 : index
    %c0_73 = arith.constant 0 : index
    %46 = vector.load %arg2[%c0_72, %c0_73] : memref<8x32xf32, #tpu.memory_space<vmem>>, vector<8x32xf32>
    %47 = vector.shape_cast %45 : vector<16x32xf32> to vector<2x8x32xf32>
    %48 = vector.shape_cast %46 : vector<8x32xf32> to vector<1x8x32xf32>
    %49 = vector.broadcast %48 : vector<1x8x32xf32> to vector<2x8x32xf32>
    %50 = arith.addf %47, %49 : vector<2x8x32xf32>
    %51 = vector.shape_cast %50 : vector<2x8x32xf32> to vector<16x32xf32>
    %52 = tpu.iota {dimensions = array<i32: 0>} : vector<8x8xi32>
    %53 = tpu.iota {dimensions = array<i32: 1>} : vector<8x8xi32>
    %54 = arith.cmpi sge, %52, %53 : vector<8x8xi32>
    %cst = arith.constant 0.000000e+00 : f32
    %cst_74 = arith.constant -1.000000e+30 : f32
    %55 = vector.broadcast %cst : f32 to vector<8x8xf32>
    %56 = vector.broadcast %cst_74 : f32 to vector<8x8xf32>
    %57 = arith.select %54, %55, %56 : vector<8x8xi1>, vector<8x8xf32>
    %58 = vector.shape_cast %57 : vector<8x8xf32> to vector<1x8x8xf32>
    %cst_75 = arith.constant dense<0.000000e+00> : vector<16xf32>
    %59 = vector.multi_reduction <add>, %51, %cst_75 [1] : vector<16x32xf32> to vector<16xf32>
    %60 = vector.shape_cast %59 : vector<16xf32> to vector<16x1xf32>
    %cst_76 = arith.constant 3.200000e+01 : f32
    %61 = vector.broadcast %cst_76 : f32 to vector<16x1xf32>
    %62 = arith.divf %60, %61 : vector<16x1xf32>
    %63 = vector.broadcast %62 : vector<16x1xf32> to vector<16x32xf32>
    %64 = arith.subf %51, %63 : vector<16x32xf32>
    %65 = arith.mulf %64, %64 : vector<16x32xf32>
    %cst_77 = arith.constant dense<0.000000e+00> : vector<16xf32>
    %66 = vector.multi_reduction <add>, %65, %cst_77 [1] : vector<16x32xf32> to vector<16xf32>
    %67 = vector.shape_cast %66 : vector<16xf32> to vector<16x1xf32>
    %cst_78 = arith.constant 3.200000e+01 : f32
    %68 = vector.broadcast %cst_78 : f32 to vector<16x1xf32>
    %69 = arith.divf %67, %68 : vector<16x1xf32>
    %70 = vector.broadcast %62 : vector<16x1xf32> to vector<16x32xf32>
    %71 = arith.subf %51, %70 : vector<16x32xf32>
    %cst_79 = arith.constant 9.99999974E-6 : f32
    %72 = vector.broadcast %cst_79 : f32 to vector<16x1xf32>
    %73 = arith.addf %69, %72 : vector<16x1xf32>
    %74 = math.rsqrt %73 : vector<16x1xf32>
    %75 = vector.broadcast %74 : vector<16x1xf32> to vector<16x32xf32>
    %76 = arith.mulf %71, %75 : vector<16x32xf32>
    %77 = vector.broadcast %0 : vector<1x32xf32> to vector<16x32xf32>
    %78 = arith.mulf %76, %77 : vector<16x32xf32>
    %79 = vector.broadcast %1 : vector<1x32xf32> to vector<16x32xf32>
    %80 = arith.addf %78, %79 : vector<16x32xf32>
    %cst_80 = arith.constant 0.000000e+00 : f32
    %81 = vector.broadcast %cst_80 : f32 to vector<16x32xf32>
    %cst_81 = arith.constant dense<0.000000e+00> : vector<16x8xf32>
    %82 = tpu.matmul %80, %14, %cst_81 {dimension_numbers = #tpu.dot_dimension_numbers<[1], [0], [0], [1], [0, 0, 1, 1], [], []>} : vector<16x32xf32>, vector<32x8xf32>, vector<16x8xf32> -> vector<16x8xf32>
    %cst_82 = arith.constant dense<0.000000e+00> : vector<16x8xf32>
    %83 = tpu.matmul %80, %22, %cst_82 {dimension_numbers = #tpu.dot_dimension_numbers<[1], [0], [0], [1], [0, 0, 1, 1], [], []>} : vector<16x32xf32>, vector<32x8xf32>, vector<16x8xf32> -> vector<16x8xf32>
    %cst_83 = arith.constant dense<0.000000e+00> : vector<16x8xf32>
    %84 = tpu.matmul %80, %30, %cst_83 {dimension_numbers = #tpu.dot_dimension_numbers<[1], [0], [0], [1], [0, 0, 1, 1], [], []>} : vector<16x32xf32>, vector<32x8xf32>, vector<16x8xf32> -> vector<16x8xf32>
    %85 = vector.shape_cast %82 : vector<16x8xf32> to vector<2x8x8xf32>
    %86 = vector.shape_cast %83 : vector<16x8xf32> to vector<2x8x8xf32>
    %87 = vector.shape_cast %84 : vector<16x8xf32> to vector<2x8x8xf32>
    "tpu.trace_start"() <{level = 10 : i32, message = "bqd,bkd->bqk"}> : () -> ()
    %cst_84 = arith.constant dense<0.000000e+00> : vector<2x8x8xf32>
    %88 = tpu.matmul %85, %86, %cst_84 {dimension_numbers = #tpu.dot_dimension_numbers<[2], [2], [1], [1], [0, 0, 0, 1, 1, 1], [0], [0]>} : vector<2x8x8xf32>, vector<2x8x8xf32>, vector<2x8x8xf32> -> vector<2x8x8xf32>
    "tpu.trace_stop"() : () -> ()
    %cst_85 = arith.constant 0.353553385 : f32
    %89 = vector.broadcast %cst_85 : f32 to vector<2x8x8xf32>
    %90 = arith.mulf %88, %89 : vector<2x8x8xf32>
    %91 = vector.broadcast %58 : vector<1x8x8xf32> to vector<2x8x8xf32>
    %92 = arith.addf %90, %91 : vector<2x8x8xf32>
    %cst_86 = arith.constant dense<0xFF800000> : vector<2x8xf32>
    %93 = vector.multi_reduction <maximumf>, %92, %cst_86 [2] : vector<2x8x8xf32> to vector<2x8xf32>
    %94 = vector.shape_cast %93 : vector<2x8xf32> to vector<2x8x1xf32>
    %95 = vector.broadcast %94 : vector<2x8x1xf32> to vector<2x8x8xf32>
    %96 = arith.subf %92, %95 : vector<2x8x8xf32>
    %97 = math.exp %96 : vector<2x8x8xf32>
    %cst_87 = arith.constant dense<0.000000e+00> : vector<2x8xf32>
    %98 = vector.multi_reduction <add>, %97, %cst_87 [2] : vector<2x8x8xf32> to vector<2x8xf32>
    %99 = vector.shape_cast %98 : vector<2x8xf32> to vector<2x8x1xf32>
    %100 = tpu.reciprocal %99 {approx = true} : vector<2x8x1xf32> -> vector<2x8x1xf32>
    %101 = vector.broadcast %100 : vector<2x8x1xf32> to vector<2x8x8xf32>
    %102 = arith.mulf %97, %101 : vector<2x8x8xf32>
    "tpu.trace_start"() <{level = 10 : i32, message = "bqk,bkd->bqd"}> : () -> ()
    %cst_88 = arith.constant dense<0.000000e+00> : vector<2x8x8xf32>
    %103 = tpu.matmul %102, %87, %cst_88 {dimension_numbers = #tpu.dot_dimension_numbers<[2], [1], [1], [2], [0, 0, 0, 1, 1, 2], [0], [0]>} : vector<2x8x8xf32>, vector<2x8x8xf32>, vector<2x8x8xf32> -> vector<2x8x8xf32>
    "tpu.trace_stop"() : () -> ()
    %104 = vector.shape_cast %103 : vector<2x8x8xf32> to vector<16x8xf32>
    %cst_89 = arith.constant dense<0.000000e+00> : vector<16x32xf32>
    %105 = tpu.matmul %104, %38, %cst_89 {dimension_numbers = #tpu.dot_dimension_numbers<[1], [0], [0], [1], [0, 0, 1, 1], [], []>} : vector<16x8xf32>, vector<8x32xf32>, vector<16x32xf32> -> vector<16x32xf32>
    %106 = arith.addf %81, %105 : vector<16x32xf32>
    %cst_90 = arith.constant dense<0.000000e+00> : vector<16x8xf32>
    %107 = tpu.matmul %80, %16, %cst_90 {dimension_numbers = #tpu.dot_dimension_numbers<[1], [0], [0], [1], [0, 0, 1, 1], [], []>} : vector<16x32xf32>, vector<32x8xf32>, vector<16x8xf32> -> vector<16x8xf32>
    %cst_91 = arith.constant dense<0.000000e+00> : vector<16x8xf32>
    %108 = tpu.matmul %80, %24, %cst_91 {dimension_numbers = #tpu.dot_dimension_numbers<[1], [0], [0], [1], [0, 0, 1, 1], [], []>} : vector<16x32xf32>, vector<32x8xf32>, vector<16x8xf32> -> vector<16x8xf32>
    %cst_92 = arith.constant dense<0.000000e+00> : vector<16x8xf32>
    %109 = tpu.matmul %80, %32, %cst_92 {dimension_numbers = #tpu.dot_dimension_numbers<[1], [0], [0], [1], [0, 0, 1, 1], [], []>} : vector<16x32xf32>, vector<32x8xf32>, vector<16x8xf32> -> vector<16x8xf32>
    %110 = vector.shape_cast %107 : vector<16x8xf32> to vector<2x8x8xf32>
    %111 = vector.shape_cast %108 : vector<16x8xf32> to vector<2x8x8xf32>
    %112 = vector.shape_cast %109 : vector<16x8xf32> to vector<2x8x8xf32>
    "tpu.trace_start"() <{level = 10 : i32, message = "bqd,bkd->bqk"}> : () -> ()
    %cst_93 = arith.constant dense<0.000000e+00> : vector<2x8x8xf32>
    %113 = tpu.matmul %110, %111, %cst_93 {dimension_numbers = #tpu.dot_dimension_numbers<[2], [2], [1], [1], [0, 0, 0, 1, 1, 1], [0], [0]>} : vector<2x8x8xf32>, vector<2x8x8xf32>, vector<2x8x8xf32> -> vector<2x8x8xf32>
    "tpu.trace_stop"() : () -> ()
    %cst_94 = arith.constant 0.353553385 : f32
    %114 = vector.broadcast %cst_94 : f32 to vector<2x8x8xf32>
    %115 = arith.mulf %113, %114 : vector<2x8x8xf32>
    %116 = vector.broadcast %58 : vector<1x8x8xf32> to vector<2x8x8xf32>
    %117 = arith.addf %115, %116 : vector<2x8x8xf32>
    %cst_95 = arith.constant dense<0xFF800000> : vector<2x8xf32>
    %118 = vector.multi_reduction <maximumf>, %117, %cst_95 [2] : vector<2x8x8xf32> to vector<2x8xf32>
    %119 = vector.shape_cast %118 : vector<2x8xf32> to vector<2x8x1xf32>
    %120 = vector.broadcast %119 : vector<2x8x1xf32> to vector<2x8x8xf32>
    %121 = arith.subf %117, %120 : vector<2x8x8xf32>
    %122 = math.exp %121 : vector<2x8x8xf32>
    %cst_96 = arith.constant dense<0.000000e+00> : vector<2x8xf32>
    %123 = vector.multi_reduction <add>, %122, %cst_96 [2] : vector<2x8x8xf32> to vector<2x8xf32>
    %124 = vector.shape_cast %123 : vector<2x8xf32> to vector<2x8x1xf32>
    %125 = tpu.reciprocal %124 {approx = true} : vector<2x8x1xf32> -> vector<2x8x1xf32>
    %126 = vector.broadcast %125 : vector<2x8x1xf32> to vector<2x8x8xf32>
    %127 = arith.mulf %122, %126 : vector<2x8x8xf32>
    "tpu.trace_start"() <{level = 10 : i32, message = "bqk,bkd->bqd"}> : () -> ()
    %cst_97 = arith.constant dense<0.000000e+00> : vector<2x8x8xf32>
    %128 = tpu.matmul %127, %112, %cst_97 {dimension_numbers = #tpu.dot_dimension_numbers<[2], [1], [1], [2], [0, 0, 0, 1, 1, 2], [0], [0]>} : vector<2x8x8xf32>, vector<2x8x8xf32>, vector<2x8x8xf32> -> vector<2x8x8xf32>
    "tpu.trace_stop"() : () -> ()
    %129 = vector.shape_cast %128 : vector<2x8x8xf32> to vector<16x8xf32>
    %cst_98 = arith.constant dense<0.000000e+00> : vector<16x32xf32>
    %130 = tpu.matmul %129, %40, %cst_98 {dimension_numbers = #tpu.dot_dimension_numbers<[1], [0], [0], [1], [0, 0, 1, 1], [], []>} : vector<16x8xf32>, vector<8x32xf32>, vector<16x32xf32> -> vector<16x32xf32>
    %131 = arith.addf %106, %130 : vector<16x32xf32>
    %cst_99 = arith.constant dense<0.000000e+00> : vector<16x8xf32>
    %132 = tpu.matmul %80, %18, %cst_99 {dimension_numbers = #tpu.dot_dimension_numbers<[1], [0], [0], [1], [0, 0, 1, 1], [], []>} : vector<16x32xf32>, vector<32x8xf32>, vector<16x8xf32> -> vector<16x8xf32>
    %cst_100 = arith.constant dense<0.000000e+00> : vector<16x8xf32>
    %133 = tpu.matmul %80, %26, %cst_100 {dimension_numbers = #tpu.dot_dimension_numbers<[1], [0], [0], [1], [0, 0, 1, 1], [], []>} : vector<16x32xf32>, vector<32x8xf32>, vector<16x8xf32> -> vector<16x8xf32>
    %cst_101 = arith.constant dense<0.000000e+00> : vector<16x8xf32>
    %134 = tpu.matmul %80, %34, %cst_101 {dimension_numbers = #tpu.dot_dimension_numbers<[1], [0], [0], [1], [0, 0, 1, 1], [], []>} : vector<16x32xf32>, vector<32x8xf32>, vector<16x8xf32> -> vector<16x8xf32>
    %135 = vector.shape_cast %132 : vector<16x8xf32> to vector<2x8x8xf32>
    %136 = vector.shape_cast %133 : vector<16x8xf32> to vector<2x8x8xf32>
    %137 = vector.shape_cast %134 : vector<16x8xf32> to vector<2x8x8xf32>
    "tpu.trace_start"() <{level = 10 : i32, message = "bqd,bkd->bqk"}> : () -> ()
    %cst_102 = arith.constant dense<0.000000e+00> : vector<2x8x8xf32>
    %138 = tpu.matmul %135, %136, %cst_102 {dimension_numbers = #tpu.dot_dimension_numbers<[2], [2], [1], [1], [0, 0, 0, 1, 1, 1], [0], [0]>} : vector<2x8x8xf32>, vector<2x8x8xf32>, vector<2x8x8xf32> -> vector<2x8x8xf32>
    "tpu.trace_stop"() : () -> ()
    %cst_103 = arith.constant 0.353553385 : f32
    %139 = vector.broadcast %cst_103 : f32 to vector<2x8x8xf32>
    %140 = arith.mulf %138, %139 : vector<2x8x8xf32>
    %141 = vector.broadcast %58 : vector<1x8x8xf32> to vector<2x8x8xf32>
    %142 = arith.addf %140, %141 : vector<2x8x8xf32>
    %cst_104 = arith.constant dense<0xFF800000> : vector<2x8xf32>
    %143 = vector.multi_reduction <maximumf>, %142, %cst_104 [2] : vector<2x8x8xf32> to vector<2x8xf32>
    %144 = vector.shape_cast %143 : vector<2x8xf32> to vector<2x8x1xf32>
    %145 = vector.broadcast %144 : vector<2x8x1xf32> to vector<2x8x8xf32>
    %146 = arith.subf %142, %145 : vector<2x8x8xf32>
    %147 = math.exp %146 : vector<2x8x8xf32>
    %cst_105 = arith.constant dense<0.000000e+00> : vector<2x8xf32>
    %148 = vector.multi_reduction <add>, %147, %cst_105 [2] : vector<2x8x8xf32> to vector<2x8xf32>
    %149 = vector.shape_cast %148 : vector<2x8xf32> to vector<2x8x1xf32>
    %150 = tpu.reciprocal %149 {approx = true} : vector<2x8x1xf32> -> vector<2x8x1xf32>
    %151 = vector.broadcast %150 : vector<2x8x1xf32> to vector<2x8x8xf32>
    %152 = arith.mulf %147, %151 : vector<2x8x8xf32>
    "tpu.trace_start"() <{level = 10 : i32, message = "bqk,bkd->bqd"}> : () -> ()
    %cst_106 = arith.constant dense<0.000000e+00> : vector<2x8x8xf32>
    %153 = tpu.matmul %152, %137, %cst_106 {dimension_numbers = #tpu.dot_dimension_numbers<[2], [1], [1], [2], [0, 0, 0, 1, 1, 2], [0], [0]>} : vector<2x8x8xf32>, vector<2x8x8xf32>, vector<2x8x8xf32> -> vector<2x8x8xf32>
    "tpu.trace_stop"() : () -> ()
    %154 = vector.shape_cast %153 : vector<2x8x8xf32> to vector<16x8xf32>
    %cst_107 = arith.constant dense<0.000000e+00> : vector<16x32xf32>
    %155 = tpu.matmul %154, %42, %cst_107 {dimension_numbers = #tpu.dot_dimension_numbers<[1], [0], [0], [1], [0, 0, 1, 1], [], []>} : vector<16x8xf32>, vector<8x32xf32>, vector<16x32xf32> -> vector<16x32xf32>
    %156 = arith.addf %131, %155 : vector<16x32xf32>
    %cst_108 = arith.constant dense<0.000000e+00> : vector<16x8xf32>
    %157 = tpu.matmul %80, %20, %cst_108 {dimension_numbers = #tpu.dot_dimension_numbers<[1], [0], [0], [1], [0, 0, 1, 1], [], []>} : vector<16x32xf32>, vector<32x8xf32>, vector<16x8xf32> -> vector<16x8xf32>
    %cst_109 = arith.constant dense<0.000000e+00> : vector<16x8xf32>
    %158 = tpu.matmul %80, %28, %cst_109 {dimension_numbers = #tpu.dot_dimension_numbers<[1], [0], [0], [1], [0, 0, 1, 1], [], []>} : vector<16x32xf32>, vector<32x8xf32>, vector<16x8xf32> -> vector<16x8xf32>
    %cst_110 = arith.constant dense<0.000000e+00> : vector<16x8xf32>
    %159 = tpu.matmul %80, %36, %cst_110 {dimension_numbers = #tpu.dot_dimension_numbers<[1], [0], [0], [1], [0, 0, 1, 1], [], []>} : vector<16x32xf32>, vector<32x8xf32>, vector<16x8xf32> -> vector<16x8xf32>
    %160 = vector.shape_cast %157 : vector<16x8xf32> to vector<2x8x8xf32>
    %161 = vector.shape_cast %158 : vector<16x8xf32> to vector<2x8x8xf32>
    %162 = vector.shape_cast %159 : vector<16x8xf32> to vector<2x8x8xf32>
    "tpu.trace_start"() <{level = 10 : i32, message = "bqd,bkd->bqk"}> : () -> ()
    %cst_111 = arith.constant dense<0.000000e+00> : vector<2x8x8xf32>
    %163 = tpu.matmul %160, %161, %cst_111 {dimension_numbers = #tpu.dot_dimension_numbers<[2], [2], [1], [1], [0, 0, 0, 1, 1, 1], [0], [0]>} : vector<2x8x8xf32>, vector<2x8x8xf32>, vector<2x8x8xf32> -> vector<2x8x8xf32>
    "tpu.trace_stop"() : () -> ()
    %cst_112 = arith.constant 0.353553385 : f32
    %164 = vector.broadcast %cst_112 : f32 to vector<2x8x8xf32>
    %165 = arith.mulf %163, %164 : vector<2x8x8xf32>
    %166 = vector.broadcast %58 : vector<1x8x8xf32> to vector<2x8x8xf32>
    %167 = arith.addf %165, %166 : vector<2x8x8xf32>
    %cst_113 = arith.constant dense<0xFF800000> : vector<2x8xf32>
    %168 = vector.multi_reduction <maximumf>, %167, %cst_113 [2] : vector<2x8x8xf32> to vector<2x8xf32>
    %169 = vector.shape_cast %168 : vector<2x8xf32> to vector<2x8x1xf32>
    %170 = vector.broadcast %169 : vector<2x8x1xf32> to vector<2x8x8xf32>
    %171 = arith.subf %167, %170 : vector<2x8x8xf32>
    %172 = math.exp %171 : vector<2x8x8xf32>
    %cst_114 = arith.constant dense<0.000000e+00> : vector<2x8xf32>
    %173 = vector.multi_reduction <add>, %172, %cst_114 [2] : vector<2x8x8xf32> to vector<2x8xf32>
    %174 = vector.shape_cast %173 : vector<2x8xf32> to vector<2x8x1xf32>
    %175 = tpu.reciprocal %174 {approx = true} : vector<2x8x1xf32> -> vector<2x8x1xf32>
    %176 = vector.broadcast %175 : vector<2x8x1xf32> to vector<2x8x8xf32>
    %177 = arith.mulf %172, %176 : vector<2x8x8xf32>
    "tpu.trace_start"() <{level = 10 : i32, message = "bqk,bkd->bqd"}> : () -> ()
    %cst_115 = arith.constant dense<0.000000e+00> : vector<2x8x8xf32>
    %178 = tpu.matmul %177, %162, %cst_115 {dimension_numbers = #tpu.dot_dimension_numbers<[2], [1], [1], [2], [0, 0, 0, 1, 1, 2], [0], [0]>} : vector<2x8x8xf32>, vector<2x8x8xf32>, vector<2x8x8xf32> -> vector<2x8x8xf32>
    "tpu.trace_stop"() : () -> ()
    %179 = vector.shape_cast %178 : vector<2x8x8xf32> to vector<16x8xf32>
    %cst_116 = arith.constant dense<0.000000e+00> : vector<16x32xf32>
    %180 = tpu.matmul %179, %44, %cst_116 {dimension_numbers = #tpu.dot_dimension_numbers<[1], [0], [0], [1], [0, 0, 1, 1], [], []>} : vector<16x8xf32>, vector<8x32xf32>, vector<16x32xf32> -> vector<16x32xf32>
    %181 = arith.addf %156, %180 : vector<16x32xf32>
    %182 = arith.addf %51, %181 : vector<16x32xf32>
    %183 = vector.broadcast %6 : vector<1x32xf32> to vector<16x32xf32>
    %184 = arith.addf %182, %183 : vector<16x32xf32>
    %cst_117 = arith.constant dense<0.000000e+00> : vector<16xf32>
    %185 = vector.multi_reduction <add>, %184, %cst_117 [1] : vector<16x32xf32> to vector<16xf32>
    %186 = vector.shape_cast %185 : vector<16xf32> to vector<16x1xf32>
    %cst_118 = arith.constant 3.200000e+01 : f32
    %187 = vector.broadcast %cst_118 : f32 to vector<16x1xf32>
    %188 = arith.divf %186, %187 : vector<16x1xf32>
    %189 = vector.broadcast %188 : vector<16x1xf32> to vector<16x32xf32>
    %190 = arith.subf %184, %189 : vector<16x32xf32>
    %191 = arith.mulf %190, %190 : vector<16x32xf32>
    %cst_119 = arith.constant dense<0.000000e+00> : vector<16xf32>
    %192 = vector.multi_reduction <add>, %191, %cst_119 [1] : vector<16x32xf32> to vector<16xf32>
    %193 = vector.shape_cast %192 : vector<16xf32> to vector<16x1xf32>
    %cst_120 = arith.constant 3.200000e+01 : f32
    %194 = vector.broadcast %cst_120 : f32 to vector<16x1xf32>
    %195 = arith.divf %193, %194 : vector<16x1xf32>
    %196 = vector.broadcast %188 : vector<16x1xf32> to vector<16x32xf32>
    %197 = arith.subf %184, %196 : vector<16x32xf32>
    %cst_121 = arith.constant 9.99999974E-6 : f32
    %198 = vector.broadcast %cst_121 : f32 to vector<16x1xf32>
    %199 = arith.addf %195, %198 : vector<16x1xf32>
    %200 = math.rsqrt %199 : vector<16x1xf32>
    %201 = vector.broadcast %200 : vector<16x1xf32> to vector<16x32xf32>
    %202 = arith.mulf %197, %201 : vector<16x32xf32>
    %203 = vector.broadcast %2 : vector<1x32xf32> to vector<16x32xf32>
    %204 = arith.mulf %202, %203 : vector<16x32xf32>
    %205 = vector.broadcast %3 : vector<1x32xf32> to vector<16x32xf32>
    %206 = arith.addf %204, %205 : vector<16x32xf32>
    %cst_122 = arith.constant dense<0.000000e+00> : vector<16x128xf32>
    %207 = tpu.matmul %206, %10, %cst_122 {dimension_numbers = #tpu.dot_dimension_numbers<[1], [0], [0], [1], [0, 0, 1, 1], [], []>} : vector<16x32xf32>, vector<32x128xf32>, vector<16x128xf32> -> vector<16x128xf32>
    %208 = vector.broadcast %7 : vector<1x128xf32> to vector<16x128xf32>
    %209 = arith.addf %207, %208 : vector<16x128xf32>
    %cst_123 = arith.constant 0.000000e+00 : f32
    %210 = vector.broadcast %cst_123 : f32 to vector<16x128xf32>
    %211 = arith.maximumf %209, %210 : vector<16x128xf32>
    %cst_124 = arith.constant dense<0.000000e+00> : vector<16x32xf32>
    %212 = tpu.matmul %211, %11, %cst_124 {dimension_numbers = #tpu.dot_dimension_numbers<[1], [0], [0], [1], [0, 0, 1, 1], [], []>} : vector<16x128xf32>, vector<128x32xf32>, vector<16x32xf32> -> vector<16x32xf32>
    %213 = arith.addf %184, %212 : vector<16x32xf32>
    %214 = vector.broadcast %8 : vector<1x32xf32> to vector<16x32xf32>
    %215 = arith.addf %213, %214 : vector<16x32xf32>
    %cst_125 = arith.constant dense<0.000000e+00> : vector<16xf32>
    %216 = vector.multi_reduction <add>, %215, %cst_125 [1] : vector<16x32xf32> to vector<16xf32>
    %217 = vector.shape_cast %216 : vector<16xf32> to vector<16x1xf32>
    %cst_126 = arith.constant 3.200000e+01 : f32
    %218 = vector.broadcast %cst_126 : f32 to vector<16x1xf32>
    %219 = arith.divf %217, %218 : vector<16x1xf32>
    %220 = vector.broadcast %219 : vector<16x1xf32> to vector<16x32xf32>
    %221 = arith.subf %215, %220 : vector<16x32xf32>
    %222 = arith.mulf %221, %221 : vector<16x32xf32>
    %cst_127 = arith.constant dense<0.000000e+00> : vector<16xf32>
    %223 = vector.multi_reduction <add>, %222, %cst_127 [1] : vector<16x32xf32> to vector<16xf32>
    %224 = vector.shape_cast %223 : vector<16xf32> to vector<16x1xf32>
    %cst_128 = arith.constant 3.200000e+01 : f32
    %225 = vector.broadcast %cst_128 : f32 to vector<16x1xf32>
    %226 = arith.divf %224, %225 : vector<16x1xf32>
    %227 = vector.broadcast %219 : vector<16x1xf32> to vector<16x32xf32>
    %228 = arith.subf %215, %227 : vector<16x32xf32>
    %cst_129 = arith.constant 9.99999974E-6 : f32
    %229 = vector.broadcast %cst_129 : f32 to vector<16x1xf32>
    %230 = arith.addf %226, %229 : vector<16x1xf32>
    %231 = math.rsqrt %230 : vector<16x1xf32>
    %232 = vector.broadcast %231 : vector<16x1xf32> to vector<16x32xf32>
    %233 = arith.mulf %228, %232 : vector<16x32xf32>
    %234 = vector.broadcast %0 : vector<1x32xf32> to vector<16x32xf32>
    %235 = arith.mulf %233, %234 : vector<16x32xf32>
    %236 = vector.broadcast %1 : vector<1x32xf32> to vector<16x32xf32>
    %237 = arith.addf %235, %236 : vector<16x32xf32>
    %cst_130 = arith.constant 0.000000e+00 : f32
    %238 = vector.broadcast %cst_130 : f32 to vector<16x32xf32>
    %cst_131 = arith.constant dense<0.000000e+00> : vector<16x8xf32>
    %239 = tpu.matmul %237, %14, %cst_131 {dimension_numbers = #tpu.dot_dimension_numbers<[1], [0], [0], [1], [0, 0, 1, 1], [], []>} : vector<16x32xf32>, vector<32x8xf32>, vector<16x8xf32> -> vector<16x8xf32>
    %cst_132 = arith.constant dense<0.000000e+00> : vector<16x8xf32>
    %240 = tpu.matmul %237, %22, %cst_132 {dimension_numbers = #tpu.dot_dimension_numbers<[1], [0], [0], [1], [0, 0, 1, 1], [], []>} : vector<16x32xf32>, vector<32x8xf32>, vector<16x8xf32> -> vector<16x8xf32>
    %cst_133 = arith.constant dense<0.000000e+00> : vector<16x8xf32>
    %241 = tpu.matmul %237, %30, %cst_133 {dimension_numbers = #tpu.dot_dimension_numbers<[1], [0], [0], [1], [0, 0, 1, 1], [], []>} : vector<16x32xf32>, vector<32x8xf32>, vector<16x8xf32> -> vector<16x8xf32>
    %242 = vector.shape_cast %239 : vector<16x8xf32> to vector<2x8x8xf32>
    %243 = vector.shape_cast %240 : vector<16x8xf32> to vector<2x8x8xf32>
    %244 = vector.shape_cast %241 : vector<16x8xf32> to vector<2x8x8xf32>
    "tpu.trace_start"() <{level = 10 : i32, message = "bqd,bkd->bqk"}> : () -> ()
    %cst_134 = arith.constant dense<0.000000e+00> : vector<2x8x8xf32>
    %245 = tpu.matmul %242, %243, %cst_134 {dimension_numbers = #tpu.dot_dimension_numbers<[2], [2], [1], [1], [0, 0, 0, 1, 1, 1], [0], [0]>} : vector<2x8x8xf32>, vector<2x8x8xf32>, vector<2x8x8xf32> -> vector<2x8x8xf32>
    "tpu.trace_stop"() : () -> ()
    %cst_135 = arith.constant 0.353553385 : f32
    %246 = vector.broadcast %cst_135 : f32 to vector<2x8x8xf32>
    %247 = arith.mulf %245, %246 : vector<2x8x8xf32>
    %248 = vector.broadcast %58 : vector<1x8x8xf32> to vector<2x8x8xf32>
    %249 = arith.addf %247, %248 : vector<2x8x8xf32>
    %cst_136 = arith.constant dense<0xFF800000> : vector<2x8xf32>
    %250 = vector.multi_reduction <maximumf>, %249, %cst_136 [2] : vector<2x8x8xf32> to vector<2x8xf32>
    %251 = vector.shape_cast %250 : vector<2x8xf32> to vector<2x8x1xf32>
    %252 = vector.broadcast %251 : vector<2x8x1xf32> to vector<2x8x8xf32>
    %253 = arith.subf %249, %252 : vector<2x8x8xf32>
    %254 = math.exp %253 : vector<2x8x8xf32>
    %cst_137 = arith.constant dense<0.000000e+00> : vector<2x8xf32>
    %255 = vector.multi_reduction <add>, %254, %cst_137 [2] : vector<2x8x8xf32> to vector<2x8xf32>
    %256 = vector.shape_cast %255 : vector<2x8xf32> to vector<2x8x1xf32>
    %257 = tpu.reciprocal %256 {approx = true} : vector<2x8x1xf32> -> vector<2x8x1xf32>
    %258 = vector.broadcast %257 : vector<2x8x1xf32> to vector<2x8x8xf32>
    %259 = arith.mulf %254, %258 : vector<2x8x8xf32>
    "tpu.trace_start"() <{level = 10 : i32, message = "bqk,bkd->bqd"}> : () -> ()
    %cst_138 = arith.constant dense<0.000000e+00> : vector<2x8x8xf32>
    %260 = tpu.matmul %259, %244, %cst_138 {dimension_numbers = #tpu.dot_dimension_numbers<[2], [1], [1], [2], [0, 0, 0, 1, 1, 2], [0], [0]>} : vector<2x8x8xf32>, vector<2x8x8xf32>, vector<2x8x8xf32> -> vector<2x8x8xf32>
    "tpu.trace_stop"() : () -> ()
    %261 = vector.shape_cast %260 : vector<2x8x8xf32> to vector<16x8xf32>
    %cst_139 = arith.constant dense<0.000000e+00> : vector<16x32xf32>
    %262 = tpu.matmul %261, %38, %cst_139 {dimension_numbers = #tpu.dot_dimension_numbers<[1], [0], [0], [1], [0, 0, 1, 1], [], []>} : vector<16x8xf32>, vector<8x32xf32>, vector<16x32xf32> -> vector<16x32xf32>
    %263 = arith.addf %238, %262 : vector<16x32xf32>
    %cst_140 = arith.constant dense<0.000000e+00> : vector<16x8xf32>
    %264 = tpu.matmul %237, %16, %cst_140 {dimension_numbers = #tpu.dot_dimension_numbers<[1], [0], [0], [1], [0, 0, 1, 1], [], []>} : vector<16x32xf32>, vector<32x8xf32>, vector<16x8xf32> -> vector<16x8xf32>
    %cst_141 = arith.constant dense<0.000000e+00> : vector<16x8xf32>
    %265 = tpu.matmul %237, %24, %cst_141 {dimension_numbers = #tpu.dot_dimension_numbers<[1], [0], [0], [1], [0, 0, 1, 1], [], []>} : vector<16x32xf32>, vector<32x8xf32>, vector<16x8xf32> -> vector<16x8xf32>
    %cst_142 = arith.constant dense<0.000000e+00> : vector<16x8xf32>
    %266 = tpu.matmul %237, %32, %cst_142 {dimension_numbers = #tpu.dot_dimension_numbers<[1], [0], [0], [1], [0, 0, 1, 1], [], []>} : vector<16x32xf32>, vector<32x8xf32>, vector<16x8xf32> -> vector<16x8xf32>
    %267 = vector.shape_cast %264 : vector<16x8xf32> to vector<2x8x8xf32>
    %268 = vector.shape_cast %265 : vector<16x8xf32> to vector<2x8x8xf32>
    %269 = vector.shape_cast %266 : vector<16x8xf32> to vector<2x8x8xf32>
    "tpu.trace_start"() <{level = 10 : i32, message = "bqd,bkd->bqk"}> : () -> ()
    %cst_143 = arith.constant dense<0.000000e+00> : vector<2x8x8xf32>
    %270 = tpu.matmul %267, %268, %cst_143 {dimension_numbers = #tpu.dot_dimension_numbers<[2], [2], [1], [1], [0, 0, 0, 1, 1, 1], [0], [0]>} : vector<2x8x8xf32>, vector<2x8x8xf32>, vector<2x8x8xf32> -> vector<2x8x8xf32>
    "tpu.trace_stop"() : () -> ()
    %cst_144 = arith.constant 0.353553385 : f32
    %271 = vector.broadcast %cst_144 : f32 to vector<2x8x8xf32>
    %272 = arith.mulf %270, %271 : vector<2x8x8xf32>
    %273 = vector.broadcast %58 : vector<1x8x8xf32> to vector<2x8x8xf32>
    %274 = arith.addf %272, %273 : vector<2x8x8xf32>
    %cst_145 = arith.constant dense<0xFF800000> : vector<2x8xf32>
    %275 = vector.multi_reduction <maximumf>, %274, %cst_145 [2] : vector<2x8x8xf32> to vector<2x8xf32>
    %276 = vector.shape_cast %275 : vector<2x8xf32> to vector<2x8x1xf32>
    %277 = vector.broadcast %276 : vector<2x8x1xf32> to vector<2x8x8xf32>
    %278 = arith.subf %274, %277 : vector<2x8x8xf32>
    %279 = math.exp %278 : vector<2x8x8xf32>
    %cst_146 = arith.constant dense<0.000000e+00> : vector<2x8xf32>
    %280 = vector.multi_reduction <add>, %279, %cst_146 [2] : vector<2x8x8xf32> to vector<2x8xf32>
    %281 = vector.shape_cast %280 : vector<2x8xf32> to vector<2x8x1xf32>
    %282 = tpu.reciprocal %281 {approx = true} : vector<2x8x1xf32> -> vector<2x8x1xf32>
    %283 = vector.broadcast %282 : vector<2x8x1xf32> to vector<2x8x8xf32>
    %284 = arith.mulf %279, %283 : vector<2x8x8xf32>
    "tpu.trace_start"() <{level = 10 : i32, message = "bqk,bkd->bqd"}> : () -> ()
    %cst_147 = arith.constant dense<0.000000e+00> : vector<2x8x8xf32>
    %285 = tpu.matmul %284, %269, %cst_147 {dimension_numbers = #tpu.dot_dimension_numbers<[2], [1], [1], [2], [0, 0, 0, 1, 1, 2], [0], [0]>} : vector<2x8x8xf32>, vector<2x8x8xf32>, vector<2x8x8xf32> -> vector<2x8x8xf32>
    "tpu.trace_stop"() : () -> ()
    %286 = vector.shape_cast %285 : vector<2x8x8xf32> to vector<16x8xf32>
    %cst_148 = arith.constant dense<0.000000e+00> : vector<16x32xf32>
    %287 = tpu.matmul %286, %40, %cst_148 {dimension_numbers = #tpu.dot_dimension_numbers<[1], [0], [0], [1], [0, 0, 1, 1], [], []>} : vector<16x8xf32>, vector<8x32xf32>, vector<16x32xf32> -> vector<16x32xf32>
    %288 = arith.addf %263, %287 : vector<16x32xf32>
    %cst_149 = arith.constant dense<0.000000e+00> : vector<16x8xf32>
    %289 = tpu.matmul %237, %18, %cst_149 {dimension_numbers = #tpu.dot_dimension_numbers<[1], [0], [0], [1], [0, 0, 1, 1], [], []>} : vector<16x32xf32>, vector<32x8xf32>, vector<16x8xf32> -> vector<16x8xf32>
    %cst_150 = arith.constant dense<0.000000e+00> : vector<16x8xf32>
    %290 = tpu.matmul %237, %26, %cst_150 {dimension_numbers = #tpu.dot_dimension_numbers<[1], [0], [0], [1], [0, 0, 1, 1], [], []>} : vector<16x32xf32>, vector<32x8xf32>, vector<16x8xf32> -> vector<16x8xf32>
    %cst_151 = arith.constant dense<0.000000e+00> : vector<16x8xf32>
    %291 = tpu.matmul %237, %34, %cst_151 {dimension_numbers = #tpu.dot_dimension_numbers<[1], [0], [0], [1], [0, 0, 1, 1], [], []>} : vector<16x32xf32>, vector<32x8xf32>, vector<16x8xf32> -> vector<16x8xf32>
    %292 = vector.shape_cast %289 : vector<16x8xf32> to vector<2x8x8xf32>
    %293 = vector.shape_cast %290 : vector<16x8xf32> to vector<2x8x8xf32>
    %294 = vector.shape_cast %291 : vector<16x8xf32> to vector<2x8x8xf32>
    "tpu.trace_start"() <{level = 10 : i32, message = "bqd,bkd->bqk"}> : () -> ()
    %cst_152 = arith.constant dense<0.000000e+00> : vector<2x8x8xf32>
    %295 = tpu.matmul %292, %293, %cst_152 {dimension_numbers = #tpu.dot_dimension_numbers<[2], [2], [1], [1], [0, 0, 0, 1, 1, 1], [0], [0]>} : vector<2x8x8xf32>, vector<2x8x8xf32>, vector<2x8x8xf32> -> vector<2x8x8xf32>
    "tpu.trace_stop"() : () -> ()
    %cst_153 = arith.constant 0.353553385 : f32
    %296 = vector.broadcast %cst_153 : f32 to vector<2x8x8xf32>
    %297 = arith.mulf %295, %296 : vector<2x8x8xf32>
    %298 = vector.broadcast %58 : vector<1x8x8xf32> to vector<2x8x8xf32>
    %299 = arith.addf %297, %298 : vector<2x8x8xf32>
    %cst_154 = arith.constant dense<0xFF800000> : vector<2x8xf32>
    %300 = vector.multi_reduction <maximumf>, %299, %cst_154 [2] : vector<2x8x8xf32> to vector<2x8xf32>
    %301 = vector.shape_cast %300 : vector<2x8xf32> to vector<2x8x1xf32>
    %302 = vector.broadcast %301 : vector<2x8x1xf32> to vector<2x8x8xf32>
    %303 = arith.subf %299, %302 : vector<2x8x8xf32>
    %304 = math.exp %303 : vector<2x8x8xf32>
    %cst_155 = arith.constant dense<0.000000e+00> : vector<2x8xf32>
    %305 = vector.multi_reduction <add>, %304, %cst_155 [2] : vector<2x8x8xf32> to vector<2x8xf32>
    %306 = vector.shape_cast %305 : vector<2x8xf32> to vector<2x8x1xf32>
    %307 = tpu.reciprocal %306 {approx = true} : vector<2x8x1xf32> -> vector<2x8x1xf32>
    %308 = vector.broadcast %307 : vector<2x8x1xf32> to vector<2x8x8xf32>
    %309 = arith.mulf %304, %308 : vector<2x8x8xf32>
    "tpu.trace_start"() <{level = 10 : i32, message = "bqk,bkd->bqd"}> : () -> ()
    %cst_156 = arith.constant dense<0.000000e+00> : vector<2x8x8xf32>
    %310 = tpu.matmul %309, %294, %cst_156 {dimension_numbers = #tpu.dot_dimension_numbers<[2], [1], [1], [2], [0, 0, 0, 1, 1, 2], [0], [0]>} : vector<2x8x8xf32>, vector<2x8x8xf32>, vector<2x8x8xf32> -> vector<2x8x8xf32>
    "tpu.trace_stop"() : () -> ()
    %311 = vector.shape_cast %310 : vector<2x8x8xf32> to vector<16x8xf32>
    %cst_157 = arith.constant dense<0.000000e+00> : vector<16x32xf32>
    %312 = tpu.matmul %311, %42, %cst_157 {dimension_numbers = #tpu.dot_dimension_numbers<[1], [0], [0], [1], [0, 0, 1, 1], [], []>} : vector<16x8xf32>, vector<8x32xf32>, vector<16x32xf32> -> vector<16x32xf32>
    %313 = arith.addf %288, %312 : vector<16x32xf32>
    %cst_158 = arith.constant dense<0.000000e+00> : vector<16x8xf32>
    %314 = tpu.matmul %237, %20, %cst_158 {dimension_numbers = #tpu.dot_dimension_numbers<[1], [0], [0], [1], [0, 0, 1, 1], [], []>} : vector<16x32xf32>, vector<32x8xf32>, vector<16x8xf32> -> vector<16x8xf32>
    %cst_159 = arith.constant dense<0.000000e+00> : vector<16x8xf32>
    %315 = tpu.matmul %237, %28, %cst_159 {dimension_numbers = #tpu.dot_dimension_numbers<[1], [0], [0], [1], [0, 0, 1, 1], [], []>} : vector<16x32xf32>, vector<32x8xf32>, vector<16x8xf32> -> vector<16x8xf32>
    %cst_160 = arith.constant dense<0.000000e+00> : vector<16x8xf32>
    %316 = tpu.matmul %237, %36, %cst_160 {dimension_numbers = #tpu.dot_dimension_numbers<[1], [0], [0], [1], [0, 0, 1, 1], [], []>} : vector<16x32xf32>, vector<32x8xf32>, vector<16x8xf32> -> vector<16x8xf32>
    %317 = vector.shape_cast %314 : vector<16x8xf32> to vector<2x8x8xf32>
    %318 = vector.shape_cast %315 : vector<16x8xf32> to vector<2x8x8xf32>
    %319 = vector.shape_cast %316 : vector<16x8xf32> to vector<2x8x8xf32>
    "tpu.trace_start"() <{level = 10 : i32, message = "bqd,bkd->bqk"}> : () -> ()
    %cst_161 = arith.constant dense<0.000000e+00> : vector<2x8x8xf32>
    %320 = tpu.matmul %317, %318, %cst_161 {dimension_numbers = #tpu.dot_dimension_numbers<[2], [2], [1], [1], [0, 0, 0, 1, 1, 1], [0], [0]>} : vector<2x8x8xf32>, vector<2x8x8xf32>, vector<2x8x8xf32> -> vector<2x8x8xf32>
    "tpu.trace_stop"() : () -> ()
    %cst_162 = arith.constant 0.353553385 : f32
    %321 = vector.broadcast %cst_162 : f32 to vector<2x8x8xf32>
    %322 = arith.mulf %320, %321 : vector<2x8x8xf32>
    %323 = vector.broadcast %58 : vector<1x8x8xf32> to vector<2x8x8xf32>
    %324 = arith.addf %322, %323 : vector<2x8x8xf32>
    %cst_163 = arith.constant dense<0xFF800000> : vector<2x8xf32>
    %325 = vector.multi_reduction <maximumf>, %324, %cst_163 [2] : vector<2x8x8xf32> to vector<2x8xf32>
    %326 = vector.shape_cast %325 : vector<2x8xf32> to vector<2x8x1xf32>
    %327 = vector.broadcast %326 : vector<2x8x1xf32> to vector<2x8x8xf32>
    %328 = arith.subf %324, %327 : vector<2x8x8xf32>
    %329 = math.exp %328 : vector<2x8x8xf32>
    %cst_164 = arith.constant dense<0.000000e+00> : vector<2x8xf32>
    %330 = vector.multi_reduction <add>, %329, %cst_164 [2] : vector<2x8x8xf32> to vector<2x8xf32>
    %331 = vector.shape_cast %330 : vector<2x8xf32> to vector<2x8x1xf32>
    %332 = tpu.reciprocal %331 {approx = true} : vector<2x8x1xf32> -> vector<2x8x1xf32>
    %333 = vector.broadcast %332 : vector<2x8x1xf32> to vector<2x8x8xf32>
    %334 = arith.mulf %329, %333 : vector<2x8x8xf32>
    "tpu.trace_start"() <{level = 10 : i32, message = "bqk,bkd->bqd"}> : () -> ()
    %cst_165 = arith.constant dense<0.000000e+00> : vector<2x8x8xf32>
    %335 = tpu.matmul %334, %319, %cst_165 {dimension_numbers = #tpu.dot_dimension_numbers<[2], [1], [1], [2], [0, 0, 0, 1, 1, 2], [0], [0]>} : vector<2x8x8xf32>, vector<2x8x8xf32>, vector<2x8x8xf32> -> vector<2x8x8xf32>
    "tpu.trace_stop"() : () -> ()
    %336 = vector.shape_cast %335 : vector<2x8x8xf32> to vector<16x8xf32>
    %cst_166 = arith.constant dense<0.000000e+00> : vector<16x32xf32>
    %337 = tpu.matmul %336, %44, %cst_166 {dimension_numbers = #tpu.dot_dimension_numbers<[1], [0], [0], [1], [0, 0, 1, 1], [], []>} : vector<16x8xf32>, vector<8x32xf32>, vector<16x32xf32> -> vector<16x32xf32>
    %338 = arith.addf %313, %337 : vector<16x32xf32>
    %339 = arith.addf %215, %338 : vector<16x32xf32>
    %340 = vector.broadcast %6 : vector<1x32xf32> to vector<16x32xf32>
    %341 = arith.addf %339, %340 : vector<16x32xf32>
    %cst_167 = arith.constant dense<0.000000e+00> : vector<16xf32>
    %342 = vector.multi_reduction <add>, %341, %cst_167 [1] : vector<16x32xf32> to vector<16xf32>
    %343 = vector.shape_cast %342 : vector<16xf32> to vector<16x1xf32>
    %cst_168 = arith.constant 3.200000e+01 : f32
    %344 = vector.broadcast %cst_168 : f32 to vector<16x1xf32>
    %345 = arith.divf %343, %344 : vector<16x1xf32>
    %346 = vector.broadcast %345 : vector<16x1xf32> to vector<16x32xf32>
    %347 = arith.subf %341, %346 : vector<16x32xf32>
    %348 = arith.mulf %347, %347 : vector<16x32xf32>
    %cst_169 = arith.constant dense<0.000000e+00> : vector<16xf32>
    %349 = vector.multi_reduction <add>, %348, %cst_169 [1] : vector<16x32xf32> to vector<16xf32>
    %350 = vector.shape_cast %349 : vector<16xf32> to vector<16x1xf32>
    %cst_170 = arith.constant 3.200000e+01 : f32
    %351 = vector.broadcast %cst_170 : f32 to vector<16x1xf32>
    %352 = arith.divf %350, %351 : vector<16x1xf32>
    %353 = vector.broadcast %345 : vector<16x1xf32> to vector<16x32xf32>
    %354 = arith.subf %341, %353 : vector<16x32xf32>
    %cst_171 = arith.constant 9.99999974E-6 : f32
    %355 = vector.broadcast %cst_171 : f32 to vector<16x1xf32>
    %356 = arith.addf %352, %355 : vector<16x1xf32>
    %357 = math.rsqrt %356 : vector<16x1xf32>
    %358 = vector.broadcast %357 : vector<16x1xf32> to vector<16x32xf32>
    %359 = arith.mulf %354, %358 : vector<16x32xf32>
    %360 = vector.broadcast %2 : vector<1x32xf32> to vector<16x32xf32>
    %361 = arith.mulf %359, %360 : vector<16x32xf32>
    %362 = vector.broadcast %3 : vector<1x32xf32> to vector<16x32xf32>
    %363 = arith.addf %361, %362 : vector<16x32xf32>
    %cst_172 = arith.constant dense<0.000000e+00> : vector<16x128xf32>
    %364 = tpu.matmul %363, %10, %cst_172 {dimension_numbers = #tpu.dot_dimension_numbers<[1], [0], [0], [1], [0, 0, 1, 1], [], []>} : vector<16x32xf32>, vector<32x128xf32>, vector<16x128xf32> -> vector<16x128xf32>
    %365 = vector.broadcast %7 : vector<1x128xf32> to vector<16x128xf32>
    %366 = arith.addf %364, %365 : vector<16x128xf32>
    %cst_173 = arith.constant 0.000000e+00 : f32
    %367 = vector.broadcast %cst_173 : f32 to vector<16x128xf32>
    %368 = arith.maximumf %366, %367 : vector<16x128xf32>
    %cst_174 = arith.constant dense<0.000000e+00> : vector<16x32xf32>
    %369 = tpu.matmul %368, %11, %cst_174 {dimension_numbers = #tpu.dot_dimension_numbers<[1], [0], [0], [1], [0, 0, 1, 1], [], []>} : vector<16x128xf32>, vector<128x32xf32>, vector<16x32xf32> -> vector<16x32xf32>
    %370 = arith.addf %341, %369 : vector<16x32xf32>
    %371 = vector.broadcast %8 : vector<1x32xf32> to vector<16x32xf32>
    %372 = arith.addf %370, %371 : vector<16x32xf32>
    %cst_175 = arith.constant dense<0.000000e+00> : vector<16xf32>
    %373 = vector.multi_reduction <add>, %372, %cst_175 [1] : vector<16x32xf32> to vector<16xf32>
    %374 = vector.shape_cast %373 : vector<16xf32> to vector<16x1xf32>
    %cst_176 = arith.constant 3.200000e+01 : f32
    %375 = vector.broadcast %cst_176 : f32 to vector<16x1xf32>
    %376 = arith.divf %374, %375 : vector<16x1xf32>
    %377 = vector.broadcast %376 : vector<16x1xf32> to vector<16x32xf32>
    %378 = arith.subf %372, %377 : vector<16x32xf32>
    %379 = arith.mulf %378, %378 : vector<16x32xf32>
    %cst_177 = arith.constant dense<0.000000e+00> : vector<16xf32>
    %380 = vector.multi_reduction <add>, %379, %cst_177 [1] : vector<16x32xf32> to vector<16xf32>
    %381 = vector.shape_cast %380 : vector<16xf32> to vector<16x1xf32>
    %cst_178 = arith.constant 3.200000e+01 : f32
    %382 = vector.broadcast %cst_178 : f32 to vector<16x1xf32>
    %383 = arith.divf %381, %382 : vector<16x1xf32>
    %384 = vector.broadcast %376 : vector<16x1xf32> to vector<16x32xf32>
    %385 = arith.subf %372, %384 : vector<16x32xf32>
    %cst_179 = arith.constant 9.99999974E-6 : f32
    %386 = vector.broadcast %cst_179 : f32 to vector<16x1xf32>
    %387 = arith.addf %383, %386 : vector<16x1xf32>
    %388 = math.rsqrt %387 : vector<16x1xf32>
    %389 = vector.broadcast %388 : vector<16x1xf32> to vector<16x32xf32>
    %390 = arith.mulf %385, %389 : vector<16x32xf32>
    %391 = vector.broadcast %4 : vector<1x32xf32> to vector<16x32xf32>
    %392 = arith.mulf %390, %391 : vector<16x32xf32>
    %393 = vector.broadcast %5 : vector<1x32xf32> to vector<16x32xf32>
    %394 = arith.addf %392, %393 : vector<16x32xf32>
    %cst_180 = arith.constant dense<0.000000e+00> : vector<16x128xf32>
    %395 = tpu.matmul %394, %12, %cst_180 {dimension_numbers = #tpu.dot_dimension_numbers<[1], [0], [0], [1], [0, 0, 1, 1], [], []>} : vector<16x32xf32>, vector<32x128xf32>, vector<16x128xf32> -> vector<16x128xf32>
    %396 = vector.broadcast %9 : vector<1x128xf32> to vector<16x128xf32>
    %397 = arith.addf %395, %396 : vector<16x128xf32>
    %c0_181 = arith.constant 0 : index
    %c0_182 = arith.constant 0 : index
    %398 = vector.load %arg20[%c0_181, %c0_182] : memref<16x128xf32, #tpu.memory_space<vmem>>, vector<16x128xf32>
    tpu.vector_store %arg20[%c0_181, %c0_182], %397 {strides = array<i32>} : memref<16x128xf32, #tpu.memory_space<vmem>>, vector<16x128xf32>,
    return
  }
  func.func @transform_0(%arg0: i32) -> (i32, i32) {
    %c0_i32 = arith.constant 0 : i32
    %c0_i32_0 = arith.constant 0 : i32
    return %arg0, %c0_i32 : i32, i32
  }
  func.func @transform_1(%arg0: i32) -> (i32, i32) {
    %c0_i32 = arith.constant 0 : i32
    %c0_i32_0 = arith.constant 0 : i32
    %c0_i32_1 = arith.constant 0 : i32
    return %c0_i32, %c0_i32_0 : i32, i32
  }
  func.func @transform_2(%arg0: i32) -> (i32, i32) {
    %c0_i32 = arith.constant 0 : i32
    %c0_i32_0 = arith.constant 0 : i32
    %c0_i32_1 = arith.constant 0 : i32
    return %c0_i32, %c0_i32_0 : i32, i32
  }
  func.func @transform_3(%arg0: i32) -> (i32, i32) {
    %c0_i32 = arith.constant 0 : i32
    %c0_i32_0 = arith.constant 0 : i32
    %c0_i32_1 = arith.constant 0 : i32
    return %c0_i32, %c0_i32_0 : i32, i32
  }
  func.func @transform_4(%arg0: i32) -> (i32, i32, i32) {
    %c0_i32 = arith.constant 0 : i32
    %c0_i32_0 = arith.constant 0 : i32
    %c0_i32_1 = arith.constant 0 : i32
    %c0_i32_2 = arith.constant 0 : i32
    return %c0_i32, %c0_i32_0, %c0_i32_1 : i32, i32, i32
  }
  func.func @transform_5(%arg0: i32) -> (i32, i32, i32) {
    %c0_i32 = arith.constant 0 : i32
    %c0_i32_0 = arith.constant 0 : i32
    %c0_i32_1 = arith.constant 0 : i32
    %c0_i32_2 = arith.constant 0 : i32
    return %c0_i32, %c0_i32_0, %c0_i32_1 : i32, i32, i32
  }
  func.func @transform_6(%arg0: i32) -> (i32, i32, i32) {
    %c0_i32 = arith.constant 0 : i32
    %c0_i32_0 = arith.constant 0 : i32
    %c0_i32_1 = arith.constant 0 : i32
    %c0_i32_2 = arith.constant 0 : i32
    return %c0_i32, %c0_i32_0, %c0_i32_1 : i32, i32, i32
  }
  func.func @transform_7(%arg0: i32) -> (i32, i32, i32) {
    %c0_i32 = arith.constant 0 : i32
    %c0_i32_0 = arith.constant 0 : i32
    %c0_i32_1 = arith.constant 0 : i32
    %c0_i32_2 = arith.constant 0 : i32
    return %c0_i32, %c0_i32_0, %c0_i32_1 : i32, i32, i32
  }
  func.func @transform_8(%arg0: i32) -> (i32, i32) {
    %c0_i32 = arith.constant 0 : i32
    %c0_i32_0 = arith.constant 0 : i32
    %c0_i32_1 = arith.constant 0 : i32
    return %c0_i32, %c0_i32_0 : i32, i32
  }
  func.func @transform_9(%arg0: i32) -> (i32, i32) {
    %c0_i32 = arith.constant 0 : i32
    %c0_i32_0 = arith.constant 0 : i32
    %c0_i32_1 = arith.constant 0 : i32
    return %c0_i32, %c0_i32_0 : i32, i32
  }
  func.func @transform_10(%arg0: i32) -> (i32, i32) {
    %c0_i32 = arith.constant 0 : i32
    %c0_i32_0 = arith.constant 0 : i32
    %c0_i32_1 = arith.constant 0 : i32
    return %c0_i32, %c0_i32_0 : i32, i32
  }
  func.func @transform_11(%arg0: i32) -> (i32, i32) {
    %c0_i32 = arith.constant 0 : i32
    %c0_i32_0 = arith.constant 0 : i32
    %c0_i32_1 = arith.constant 0 : i32
    return %c0_i32, %c0_i32_0 : i32, i32
  }
  func.func @transform_12(%arg0: i32) -> (i32, i32) {
    %c0_i32 = arith.constant 0 : i32
    %c0_i32_0 = arith.constant 0 : i32
    %c0_i32_1 = arith.constant 0 : i32
    return %c0_i32, %c0_i32_0 : i32, i32
  }
  func.func @transform_13(%arg0: i32) -> (i32, i32) {
    %c0_i32 = arith.constant 0 : i32
    %c0_i32_0 = arith.constant 0 : i32
    %c0_i32_1 = arith.constant 0 : i32
    return %c0_i32, %c0_i32_0 : i32, i32
  }
  func.func @transform_14(%arg0: i32) -> (i32, i32) {
    %c0_i32 = arith.constant 0 : i32
    %c0_i32_0 = arith.constant 0 : i32
    %c0_i32_1 = arith.constant 0 : i32
    return %c0_i32, %c0_i32_0 : i32, i32
  }
  func.func @transform_15(%arg0: i32) -> (i32, i32) {
    %c0_i32 = arith.constant 0 : i32
    %c0_i32_0 = arith.constant 0 : i32
    %c0_i32_1 = arith.constant 0 : i32
    return %c0_i32, %c0_i32_0 : i32, i32
  }
  func.func @transform_16(%arg0: i32) -> (i32, i32) {
    %c0_i32 = arith.constant 0 : i32
    %c0_i32_0 = arith.constant 0 : i32
    %c0_i32_1 = arith.constant 0 : i32
    return %c0_i32, %c0_i32_0 : i32, i32
  }
  func.func @transform_17(%arg0: i32) -> (i32, i32) {
    %c0_i32 = arith.constant 0 : i32
    %c0_i32_0 = arith.constant 0 : i32
    %c0_i32_1 = arith.constant 0 : i32
    return %c0_i32, %c0_i32_0 : i32, i32
  }
  func.func @transform_18(%arg0: i32) -> (i32, i32) {
    %c0_i32 = arith.constant 0 : i32
    %c0_i32_0 = arith.constant 0 : i32
    %c0_i32_1 = arith.constant 0 : i32
    return %c0_i32, %c0_i32_0 : i32, i32
  }
  func.func @transform_19(%arg0: i32) -> (i32, i32) {
    %c0_i32 = arith.constant 0 : i32
    %c0_i32_0 = arith.constant 0 : i32
    return %arg0, %c0_i32 : i32, i32
  }
}

</mosaic_0001>

<bundles_post_ra>
// kernel: pottergpt_forward.1
= control target key start
LH: loop header
LB: loop body
LE: loop exit
PB: predicated region body
PF: predicated region fallthrough
CT: control target
= control target key end

     0   :  { %s3753_s0 = inlined_call_operand.vmem [shape: f32[16,32], index: 0, kind: input, shape index: {}]   ;;  %s3754_s1 = inlined_call_operand.vmem [shape: f32[8,32], index: 1, kind: input, shape index: {}]   ;;  %s3755_s2 = inlined_call_operand.vmem [shape: f32[1,32], index: 2, kind: input, shape index: {}]   ;;  %s3756_s3 = inlined_call_operand.vmem [shape: f32[1,32], index: 3, kind: input, shape index: {}]   ;;  %s3757_s4 = inlined_call_operand.vmem [shape: f32[4,32,8], index: 4, kind: input, shape index: {}]   ;;  %s3758_s5 = inlined_call_operand.vmem [shape: f32[4,32,8], index: 5, kind: input, shape index: {}]   ;;  %s3759_s6 = inlined_call_operand.vmem [shape: f32[4,32,8], index: 6, kind: input, shape index: {}]   ;;  %s3760_s7 = inlined_call_operand.vmem [shape: f32[4,8,32], index: 7, kind: input, shape index: {}]   ;;  %s3761_s8 = inlined_call_operand.vmem [shape: f32[1,32], index: 8, kind: input, shape index: {}]   ;;  %s3762_s9 = inlined_call_operand.vmem [shape: f32[1,32], index: 9, kind: input, shape index: {}]   ;;  %s3763_s10 = inlined_call_operand.vmem [shape: f32[1,32], index: 10, kind: input, shape index: {}]   ;;  %s3764_s11 = inlined_call_operand.vmem [shape: f32[32,128], index: 11, kind: input, shape index: {}]   ;;  %s3765_s12 = inlined_call_operand.vmem [shape: f32[1,128], index: 12, kind: input, shape index: {}]   ;;  %s3766_s13 = inlined_call_operand.vmem [shape: f32[128,32], index: 13, kind: input, shape index: {}]   ;;  %s3767_s14 = inlined_call_operand.vmem [shape: f32[1,32], index: 14, kind: input, shape index: {}]   ;;  %s3768_s15 = inlined_call_operand.vmem [shape: f32[1,32], index: 15, kind: input, shape index: {}]   ;;  %s3769_s16 = inlined_call_operand.vmem [shape: f32[1,32], index: 16, kind: input, shape index: {}]   ;;  %s3770_s17 = inlined_call_operand.vmem [shape: f32[32,128], index: 17, kind: input, shape index: {}]   ;;  %s3771_s18 = inlined_call_operand.vmem [shape: f32[1,128], index: 18, kind: input, shape index: {}]   ;;  %s3772_s19 = inlined_call_operand.hbm [shape: f32[16,128], index: 19, kind: output, shape index: {}]  }
   0x1   :  { %3797 = sst [smem:[#allocation23_spill]] %s3753_s0 }
   0x2   :  { %3798 = sst [smem:[#allocation24_spill]] %s3754_s1 }
   0x3   :  { %3799 = sst [smem:[#allocation25_spill]] %s3755_s2 }
   0x4   :  { %3800 = sst [smem:[#allocation26_spill]] %s3756_s3 }
   0x5   :  { %3801 = sst [smem:[#allocation27_spill]] %s3767_s14 }
   0x6   :  { %s3802_s20 = sld [smem:[#allocation23_spill]]  ;;  %vm172_vm0 = vcmask 261120  }
   0x7   :  { %s3803_s14 = sld [smem:[#allocation24_spill]] }
   0xc   :  { %v161_v0 = vld [vmem:[%s3802_s20] sm:$0xff]  ;;  %v162_v2 = vld [vmem:[%s3802_s20 + $0x8] sm:$0xff] }
   0xd   :  { %v163_v1 = vld [vmem:[%s3803_s14] sm:$0xff] }
   0xe   :  { %v2826_v3 = vadd.f32 %v163_v1, %v161_v0 }
  0x10   :  { %v173_v4 = vsel %vm172_vm0, %v2826_v3, 0.0 }
  0x11   :  { %174 = vadd.xlane.f32.xlu0 %v173_v4 }
  0x12   :  { %24 = vsyncpa [#allocation3], 0  ;;  %v2830_v5 = vadd.f32 %v163_v1, %v162_v2  ;;  %v2712_v7 = vmov 32.0   ;;  %v2853_v24 = vld [vmem:[%s3757_s4 + $0x18] sm:$0xff]  ;;  %v2871_v27 = vld [vmem:[%s3757_s4 + $0x10] sm:$0xff]  ;;  %s3804_s30 = sld [smem:[#allocation25_spill]] }
  0x13   :  { %2592 = vrcp.f32 %v2712_v7  ;;  %v2858_v25 = vld [vmem:[%s3758_s5 + $0x18] sm:$0xff]  ;;  %252 = vmatpush.msra.mxu0 %v2853_v24  ;;  %v2876_v28 = vld [vmem:[%s3758_s5 + $0x10] sm:$0xff]  ;;  %v2889_v30 = vld [vmem:[%s3757_s4 + $0x8] sm:$0xff]  ;;  %s3805_s1 = sld [smem:[#allocation26_spill]]  ;;  %vm309_vm8 = vcmask 64512   ;;  %s2715_s28 = smov 128  }
  0x14   :  { %v176_v6 = vsel %vm172_vm0, %v2830_v5, 0.0  ;;  %v2863_v26 = vld [vmem:[%s3759_s6 + $0x18] sm:$0xff]  ;;  %275 = vmatpush.msra.mxu1 %v2858_v25  ;;  %v2883_v29 = vld [vmem:[%s3759_s6 + $0x10] sm:$0xff]  ;;  %v2894_v31 = vld [vmem:[%s3758_s5 + $0x8] sm:$0xff]  ;;  %s3821_s24 = sld [smem:[#allocation27_spill]]  ;;  %s2716_s29 = smov 8  }
  0x15   :  { %298 = vmatpush.msra.mxu2 %v2863_v26  ;;  %253 = vmatpush.msra.mxu0 %v2871_v27  ;;  %v2901_v32 = vld [vmem:[%s3759_s6 + $0x8] sm:$0xff]  ;;  %v2907_v33 = vld [vmem:[%s3757_s4] sm:$0xff]  ;;  %v2423_v39 = vld [vmem:[%s3757_s4 + $0x38] sm:$0xff] }
  0x16   :  { %276 = vmatpush.msra.mxu1 %v2876_v28  ;;  %v2912_v34 = vld [vmem:[%s3758_s5] sm:$0xff]  ;;  %v2435_v40 = vld [vmem:[%s3758_s5 + $0x38] sm:$0xff]  ;;  %v2422_v41 = vld [vmem:[%s3757_s4 + $0x30] sm:$0xff] }
  0x17   :  { %299 = vmatpush.msra.mxu2 %v2883_v29  ;;  %254 = vmatpush.msra.mxu0 %v2889_v30  ;;  %v2917_v35 = vld [vmem:[%s3759_s6] sm:$0xff]  ;;  %v2434_v42 = vld [vmem:[%s3758_s5 + $0x30] sm:$0xff]  ;;  %v2421_v44 = vld [vmem:[%s3757_s4 + $0x28] sm:$0xff] }
  0x18   :  { %277 = vmatpush.msra.mxu1 %v2894_v31  ;;  %v2433_v45 = vld [vmem:[%s3758_s5 + $0x28] sm:$0xff]  ;;  %v2420_v47 = vld [vmem:[%s3757_s4 + $0x20] sm:$0xff] }
  0x19   :  { %177 = vadd.xlane.f32.xlu0 %v176_v6  ;;  %v2593_v8 = vpop.eup %2592  ;;  %300 = vmatpush.msra.mxu2 %v2901_v32  ;;  %v2432_v48 = vld [vmem:[%s3758_s5 + $0x20] sm:$0xff] }
  0x1a   :  { %v180_v9 = vmul.f32 32.0, %v2593_v8  ;;  %vm184_vm1 = vweird.f32 %v2593_v8  ;;  %255 = vmatpush.msra.mxu0 %v2907_v33  ;;  %278 = vmatpush.msra.mxu1 %v2912_v34  ;;  %v2951_v58 = vld [vmem:[%s3804_s30] ss:$0 sm:$0xff] }
  0x1b   :  { %301 = vmatpush.msra.mxu2 %v2917_v35  ;;  %v2957_v62 = vld [vmem:[%s3805_s1] ss:$0 sm:$0xff] }
  0x1c   :  { %v181_v10 = vsub.f32 1.0, %v180_v9  ;;  %446 = vmatpush.msrb.mxu1 %v2423_v39 }
  0x1d   :  { %469 = vmatpush.msrb.mxu2 %v2435_v40 }
  0x1e   :  { %v182_v11 = vmul.f32 %v2593_v8, %v181_v10  ;;  %447 = vmatpush.msrb.mxu1 %v2422_v41 }
  0x1f   :  { %470 = vmatpush.msrb.mxu2 %v2434_v42 }
  0x20   :  { %v183_v12 = vadd.f32 %v2593_v8, %v182_v11  ;;  %448 = vmatpush.msrb.mxu1 %v2421_v44 }
  0x21   :  { %471 = vmatpush.msrb.mxu2 %v2433_v45 }
  0x22   :  { %v2834_v13 = vsel %vm184_vm1, %v2593_v8, %v183_v12  ;;  %449 = vmatpush.msrb.mxu1 %v2420_v47 }
  0x23   :  { %472 = vmatpush.msrb.mxu2 %v2432_v48 }
  0x84   :  { %v175_v14 = vpop.xlane.xlu0 %174 }
  0x85   :  { %v186_v15 = vmul.f32 %v2834_v13, %v175_v14 }
  0x87   :  { %v2838_v16 = vsub.f32 %v2826_v3, %v186_v15 }
  0x89   :  { %v190_v17 = vmul.f32 %v2838_v16, %v2838_v16 }
  0x8b   :  { %v192_v18 = vsel %vm172_vm0, %v190_v17, 0.0 }
  0x8c   :  { %193 = vadd.xlane.f32.xlu1 %v192_v18  ;;  %v178_v19 = vpop.xlane.xlu0 %177  ;;  %v166_v18 = vlaneseq }
  0x8d   :  { %v187_v20 = vmul.f32 %v2834_v13, %v178_v19 }
  0x8e   :  { %v167_v19 = vshrl.u32 %v166_v18, 7 }
  0x8f   :  { %v2845_v21 = vsub.f32 %v2830_v5, %v187_v20  ;;  %v169_v20 = vand.u32 127, %v166_v18 }
  0x91   :  { %v191_v22 = vmul.f32 %v2845_v21, %v2845_v21  ;;  %vm170_vm9 = vcmp.ge.s32.totalorder %v167_v19, %v169_v20 }
  0x93   :  { %v195_v23 = vsel %vm172_vm0, %v191_v22, 0.0  ;;  %v2713_v22 = vmov -1e+30  }
  0x94   :  { %196 = vadd.xlane.f32.xlu1 %v195_v23  ;;  %v2993_v23 = vsel %vm170_vm9, 0.0, %v2713_v22 }
  0xff   :  { %v194_v36 = vpop.xlane.xlu1 %193 }
 0x100   :  { %v198_v37 = vmul.f32 %v194_v36, %v2834_v13 }
 0x102   :  { %v200_v38 = vadd.f32 1e-05, %v198_v37 }
 0x104   :  { %2594 = vrsqrt.f32 %v200_v38  ;;  %vm208_vm3 = vweird.f32 %v200_v38 }
 0x107   :  { %v197_v43 = vpop.xlane.xlu1 %196 }
 0x108   :  { %v199_v46 = vmul.f32 %v197_v43, %v2834_v13 }
 0x10a   :  { %v2595_v49 = vpop.eup %2594  ;;  %v201_v50 = vadd.f32 1e-05, %v199_v46 }
 0x10b   :  { %v203_v51 = vmul.f32 %v2595_v49, %v200_v38  ;;  %vm209_vm2 = vweird.f32 %v2595_v49 }
 0x10c   :  { %2596 = vrsqrt.f32 %v201_v50  ;;  %vm210_vm4 = vmor %vm208_vm3, %vm209_vm2  ;;  %vm218_vm6 = vweird.f32 %v201_v50 }
 0x10d   :  { %v204_v52 = vmul.f32 %v2595_v49, %v203_v51 }
 0x10f   :  { %v205_v53 = vmul.f32 0.5, %v204_v52 }
 0x111   :  { %v206_v54 = vsub.f32 1.5, %v205_v53  ;;  %v3004_v53 = vld [vmem:[%s3759_s6 + $0x38] sm:$0xff] }
 0x112   :  { %v2597_v55 = vpop.eup %2596 }
 0x113   :  { %v207_v56 = vmul.f32 %v2595_v49, %v206_v54  ;;  %v213_v57 = vmul.f32 %v2597_v55, %v201_v50  ;;  %vm219_vm5 = vweird.f32 %v2597_v55  ;;  %v3009_v54 = vld [vmem:[%s3759_s6 + $0x30] sm:$0xff] }
 0x114   :  { %vm220_vm7 = vmor %vm218_vm6, %vm219_vm5 }
 0x115   :  { %v211_v59 = vsel %vm210_vm4, %v2595_v49, %v207_v56  ;;  %v214_v60 = vmul.f32 %v2597_v55, %v213_v57  ;;  %v3021_v56 = vld [vmem:[%s3759_s6 + $0x20] sm:$0xff] }
 0x116   :  { %v222_v61 = vmul.f32 %v211_v59, %v2838_v16 }
 0x117   :  { %v215_v63 = vmul.f32 0.5, %v214_v60 }
 0x118   :  { %v227_v0 = vmul.f32 %v2951_v58, %v222_v61 }
 0x119   :  { %v216_v1 = vsub.f32 1.5, %v215_v63 }
 0x11a   :  { %v2961_v2 = vadd.f32 %v2957_v62, %v227_v0 }
 0x11b   :  { %v217_v4 = vmul.f32 %v2597_v55, %v216_v1 }
 0x11c   :  { %2459 = vmatmul.msk.f32.vlgmr.msra.gmra.mxu0 %vm172_vm0, %v2961_v2  ;;  %2461 = vmatmul.msk.f32.vlgmr.msra.gmra.mxu1 %vm172_vm0, %v2961_v2 }
 0x11d   :  { %v221_v6 = vsel %vm220_vm7, %v2597_v55, %v217_v4  ;;  %2463 = vmatmul.msk.f32.vlgmr.msra.gmra.mxu2 %vm172_vm0, %v2961_v2  ;;  %v3015_v55 = vld [vmem:[%s3759_s6 + $0x28] sm:$0xff] }
 0x11e   :  { %v223_v7 = vmul.f32 %v221_v6, %v2845_v21 }
 0x120   :  { %v228_v8 = vmul.f32 %v2951_v58, %v223_v7  ;;  %v3037_v7 = vld [vmem:[%s3760_s7] sm:$0xff] }
 0x122   :  { %v2972_v9 = vadd.f32 %v2957_v62, %v228_v8 }
 0x124   :  { %2460 = vmatmul.msk.f32.gmra.mxu0 %vm172_vm0, %v2972_v9  ;;  %2462 = vmatmul.msk.f32.gmra.mxu1 %vm172_vm0, %v2972_v9 }
 0x125   :  { %2464 = vmatmul.msk.f32.gmra.mxu2 %vm172_vm0, %v2972_v9 }
 0x12c   :  { %2471 = vmatmul.msk.f32.vlgmr.msrb.gmra.mxu1 %vm172_vm0, %v2961_v2 }
 0x12d   :  { %2473 = vmatmul.msk.f32.vlgmr.msrb.gmra.mxu2 %vm172_vm0, %v2961_v2 }
 0x134   :  { %2472 = vmatmul.msk.f32.gmra.mxu1 %vm172_vm0, %v2972_v9 }
 0x135   :  { %2474 = vmatmul.msk.f32.gmra.mxu2 %vm172_vm0, %v2972_v9 }
 0x199   :  { %v280_v10 = vpop.f32.mrf.mxu1  ;;  %v257_v11 = vpop.f32.mrf.mxu0 }
 0x19a   :  { %2465 = vmatpush.xpose.msk.msra.mxu3 %vm309_vm8, %v280_v10 }
 0x19d   :  { %2466 = vmatmul.msk.f32.vlgmr.msra.gmra.mxu3 %vm309_vm8, %v257_v11 }
 0x1a0   :  { %v303_v12 = vpop.f32.mrf.mxu2 }
 0x1a1   :  { %v283_v14 = vpop.f32.mrf.mxu1  ;;  %v260_v15 = vpop.f32.mrf.mxu0 }
 0x1a2   :  { %2467 = vmatpush.xpose.msk.msrb.mxu3 %vm309_vm8, %v283_v14 }
 0x1a5   :  { %2468 = vmatmul.msk.f32.vlgmr.msrb.gmra.mxu3 %vm309_vm8, %v260_v15 }
 0x1a6   :  { %406 = vmatpush.msra.mxu3 %v303_v12 }
 0x1a8   :  { %v306_v16 = vpop.f32.mrf.mxu2  ;;  %492 = vmatpush.msrb.mxu3 %v3004_v53 }
 0x1a9   :  { %429 = vmatpush.msrb.mxu0 %v306_v16  ;;  %v451_v4 = vpop.f32.mrf.mxu1 }
 0x1aa   :  { %493 = vmatpush.msrb.mxu3 %v3009_v54 }
 0x1ac   :  { %494 = vmatpush.msrb.mxu3 %v3015_v55 }
 0x1ae   :  { %495 = vmatpush.msrb.mxu3 %v3021_v56 }
 0x1b0   :  { %v474_v17 = vpop.f32.mrf.mxu2 }
 0x1b1   :  { %2477 = vmatpush.xpose.msk.msra.mxu0 %vm309_vm8, %v474_v17  ;;  %v454_v6 = vpop.f32.mrf.mxu1 }
 0x1b8   :  { %v477_v1 = vpop.f32.mrf.mxu2 }
 0x220   :  { %v333_v21 = vpop.f32.mrf.mxu3 }
 0x221   :  { %v362_v36 = vmul.f32 0.35355338, %v333_v21 }
 0x223   :  { %v364_v37 = vadd.f32 %v362_v36, %v2993_v23 }
 0x225   :  { %v366_v38 = vsel %vm309_vm8, %v364_v37, -inf }
 0x226   :  { %367 = vmax.xlane.f32.xlu0 %v366_v38 }
 0x228   :  { %v359_v39 = vpop.f32.mrf.mxu3 }
 0x229   :  { %v363_v40 = vmul.f32 0.35355338, %v359_v39 }
 0x22b   :  { %v365_v41 = vadd.f32 %v363_v40, %v2993_v23 }
 0x22d   :  { %v369_v42 = vsel %vm309_vm8, %v365_v41, -inf }
 0x22e   :  { %370 = vmax.xlane.f32.xlu2 %v369_v42 }
 0x299   :  { %v368_v43 = vpop.xlane.xlu0 %367 }
 0x29a   :  { %v372_v44 = vsub.f32 %v364_v37, %v368_v43 }
 0x29c   :  { %v374_v45 = vmul.f32 1.442695, %v372_v44 }
 0x29e   :  { %2598 = vpow2.f32 %v374_v45  ;;  %v3051_v45 = vld [vmem:[%s3757_s4 + $0x58] sm:$0xff] }
 0x2a1   :  { %v371_v46 = vpop.xlane.xlu2 %370 }
 0x2a2   :  { %v373_v47 = vsub.f32 %v365_v41, %v371_v46  ;;  %v3057_v46 = vld [vmem:[%s3757_s4 + $0x50] sm:$0xff] }
 0x2a4   :  { %v2599_v48 = vpop.eup %2598  ;;  %v376_v49 = vmul.f32 1.442695, %v373_v47  ;;  %v3063_v47 = vld [vmem:[%s3757_s4 + $0x48] sm:$0xff] }
 0x2a5   :  { %v378_v50 = vsel %vm309_vm8, %v2599_v48, 0.0 }
 0x2a6   :  { %2600 = vpow2.f32 %v376_v49  ;;  %379 = vadd.xlane.f32.xlu1 %v378_v50  ;;  %v3075_v49 = vld [vmem:[%s3758_s5 + $0x58] sm:$0xff]  ;;  %v3080_v50 = vld [vmem:[%s3758_s5 + $0x50] sm:$0xff] }
 0x2ac   :  { %v2601_v51 = vpop.eup %2600 }
 0x2ad   :  { %v381_v52 = vsel %vm309_vm8, %v2601_v51, 0.0 }
 0x2ae   :  { %382 = vadd.xlane.f32.xlu2 %v381_v52  ;;  %v3092_v52 = vld [vmem:[%s3758_s5 + $0x40] sm:$0xff] }
 0x319   :  { %v380_v57 = vpop.xlane.xlu1 %379 }
 0x31a   :  { %2602 = vrcp.f32 %v380_v57 }
 0x320   :  { %v2603_v59 = vpop.eup %2602 }
 0x321   :  { %v386_v60 = vmul.f32 %v2603_v59, %v2599_v48  ;;  %v383_v61 = vpop.xlane.xlu2 %382  ;;  %v3069_v48 = vld [vmem:[%s3757_s4 + $0x40] sm:$0xff] }
 0x322   :  { %2604 = vrcp.f32 %v383_v61 }
 0x323   :  { %2469 = vmatmul.msk.f32.vlgmr.msra.gmra.mxu3 %vm309_vm8, %v386_v60 }
 0x328   :  { %v2605_v63 = vpop.eup %2604 }
 0x329   :  { %v387_v0 = vmul.f32 %v2605_v63, %v2601_v51  ;;  %v3086_v51 = vld [vmem:[%s3758_s5 + $0x48] sm:$0xff] }
 0x32b   :  { %2470 = vmatmul.msk.f32.vlgmr.msrb.gmra.mxu0 %vm309_vm8, %v387_v0  ;;  %2475 = vmatmul.msk.f32.vlgmr.msrb.gmra.mxu3 %vm172_vm0, %v2961_v2 }
 0x32c   :  { %2479 = vmatpush.xpose.msk.msrb.mxu0 %vm309_vm8, %v477_v1  ;;  %v3109_v1 = vld [vmem:[%s3760_s7 + $0x8] sm:$0xff] }
 0x32d   :  { %648 = vmatpush.msra.mxu3 %v3109_v1 }
 0x333   :  { %2476 = vmatmul.msk.f32.gmra.mxu3 %vm172_vm0, %v2972_v9  ;;  %2478 = vmatmul.msk.f32.vlgmr.msra.gmra.mxu0 %vm309_vm8, %v451_v4  ;;  %v3115_v4 = vld [vmem:[%s3759_s6 + $0x58] sm:$0xff] }
 0x334   :  { %677 = vmatpush.msra.mxu0 %v3037_v7  ;;  %743 = vmatpush.msrb.mxu3 %v3115_v4 }
 0x33b   :  { %2480 = vmatmul.msk.f32.vlgmr.msrb.gmra.mxu0 %vm309_vm8, %v454_v6  ;;  %v3120_v6 = vld [vmem:[%s3759_s6 + $0x50] sm:$0xff] }
 0x33c   :  { %744 = vmatpush.msrb.mxu3 %v3120_v6 }
 0x3a6   :  { %v408_v8 = vpop.f32.mrf.mxu3 }
 0x3a7   :  { %2485 = vmatmul.msk.f32.vlgmr.msra.gmra.mxu0 %vm309_vm8, %v408_v8  ;;  %v3126_v8 = vld [vmem:[%s3759_s6 + $0x48] sm:$0xff] }
 0x3a8   :  { %v431_v10 = vpop.f32.mrf.mxu0  ;;  %745 = vmatpush.msrb.mxu3 %v3126_v8 }
 0x3ae   :  { %v497_v11 = vpop.f32.mrf.mxu3 }
 0x3af   :  { %599 = vmatpush.msra.mxu1 %v497_v11  ;;  %2486 = vmatmul.msk.f32.gmra.mxu0 %vm309_vm8, %v431_v10  ;;  %v3133_v10 = vld [vmem:[%s3759_s6 + $0x40] sm:$0xff]  ;;  %v3139_v11 = vld [vmem:[%s3758_s5 + $0x78] sm:$0xff] }
 0x3b0   :  { %v526_v12 = vpop.f32.mrf.mxu0  ;;  %746 = vmatpush.msrb.mxu3 %v3133_v10 }
 0x3b1   :  { %v555_v14 = vmul.f32 0.35355338, %v526_v12  ;;  %697 = vmatpush.msrb.mxu1 %v3051_v45 }
 0x3b3   :  { %v557_v15 = vadd.f32 %v555_v14, %v2993_v23  ;;  %698 = vmatpush.msrb.mxu1 %v3057_v46  ;;  %v3146_v14 = vld [vmem:[%s3758_s5 + $0x70] sm:$0xff] }
 0x3b5   :  { %v559_v16 = vsel %vm309_vm8, %v557_v15, -inf  ;;  %699 = vmatpush.msrb.mxu1 %v3063_v47 }
 0x3b6   :  { %v500_v17 = vpop.f32.mrf.mxu3  ;;  %560 = vmax.xlane.f32.xlu0 %v559_v16  ;;  %v3157_v16 = vld [vmem:[%s3758_s5 + $0x60] sm:$0xff] }
 0x3b7   :  { %622 = vmatpush.msra.mxu2 %v500_v17  ;;  %700 = vmatpush.msrb.mxu1 %v3069_v48 }
 0x3b8   :  { %v552_v18 = vpop.f32.mrf.mxu0 }
 0x3b9   :  { %v556_v19 = vmul.f32 0.35355338, %v552_v18  ;;  %720 = vmatpush.msrb.mxu2 %v3075_v49 }
 0x3bb   :  { %v558_v20 = vadd.f32 %v556_v19, %v2993_v23  ;;  %721 = vmatpush.msrb.mxu2 %v3080_v50 }
 0x3bd   :  { %v562_v21 = vsel %vm309_vm8, %v558_v20, -inf  ;;  %722 = vmatpush.msrb.mxu2 %v3086_v51 }
 0x3be   :  { %563 = vmax.xlane.f32.xlu2 %v562_v21 }
 0x3bf   :  { %723 = vmatpush.msrb.mxu2 %v3092_v52 }
 0x429   :  { %v561_v22 = vpop.xlane.xlu0 %560 }
 0x42a   :  { %v565_v36 = vsub.f32 %v557_v15, %v561_v22  ;;  %v3151_v15 = vld [vmem:[%s3758_s5 + $0x68] sm:$0xff]  ;;  %v3174_v22 = vpop.f32.mrf.mxu0 }
 0x42c   :  { %v567_v37 = vmul.f32 1.442695, %v565_v36  ;;  %v3179_v36 = vld [vmem:[%s3760_s7 + $0x10] sm:$0xff] }
 0x42e   :  { %2606 = vpow2.f32 %v567_v37 }
 0x431   :  { %v564_v38 = vpop.xlane.xlu2 %563 }
 0x432   :  { %v566_v39 = vsub.f32 %v558_v20, %v564_v38  ;;  %v682_v38 = vpop.f32.mrf.mxu0 }
 0x434   :  { %v2607_v40 = vpop.eup %2606  ;;  %v569_v41 = vmul.f32 1.442695, %v566_v39 }
 0x435   :  { %v571_v42 = vsel %vm309_vm8, %v2607_v40, 0.0 }
 0x436   :  { %2608 = vpow2.f32 %v569_v41  ;;  %572 = vadd.xlane.f32.xlu2 %v571_v42 }
 0x43c   :  { %v2609_v43 = vpop.eup %2608 }
 0x43d   :  { %v574_v44 = vsel %vm309_vm8, %v2609_v43, 0.0 }
 0x43e   :  { %575 = vadd.xlane.f32.xlu1 %v574_v44 }
 0x4a9   :  { %v573_v57 = vpop.xlane.xlu2 %572 }
 0x4aa   :  { %2610 = vrcp.f32 %v573_v57 }
 0x4b0   :  { %v2611_v59 = vpop.eup %2610 }
 0x4b1   :  { %v579_v60 = vmul.f32 %v2611_v59, %v2607_v40  ;;  %v576_v61 = vpop.xlane.xlu1 %575 }
 0x4b2   :  { %2612 = vrcp.f32 %v576_v61 }
 0x4b3   :  { %2481 = vmatmul.msk.f32.vlgmr.msra.gmra.mxu1 %vm309_vm8, %v579_v60 }
 0x4b8   :  { %v2613_v63 = vpop.eup %2612 }
 0x4b9   :  { %v580_v0 = vmul.f32 %v2613_v63, %v2609_v43 }
 0x4bb   :  { %2482 = vmatmul.msk.f32.vlgmr.msra.gmra.mxu2 %vm309_vm8, %v580_v0  ;;  %2487 = vmatmul.msk.f32.vlgmr.msrb.gmra.mxu1 %vm172_vm0, %v2961_v2 }
 0x4c3   :  { %2488 = vmatmul.msk.f32.gmra.mxu1 %vm172_vm0, %v2972_v9  ;;  %2489 = vmatmul.msk.f32.vlgmr.msrb.gmra.mxu2 %vm172_vm0, %v2961_v2 }
 0x4cb   :  { %2490 = vmatmul.msk.f32.gmra.mxu2 %vm172_vm0, %v2972_v9 }
 0x530   :  { %v601_v12 = vpop.f32.mrf.mxu1 }
 0x531   :  { %2483 = vmatmul.msk.f32.vlgmr.msra.gmra.mxu3 %vm309_vm8, %v601_v12 }
 0x532   :  { %944 = vmatpush.msra.mxu3 %v3139_v11 }
 0x534   :  { %945 = vmatpush.msra.mxu3 %v3146_v14 }
 0x536   :  { %946 = vmatpush.msra.mxu3 %v3151_v15 }
 0x538   :  { %947 = vmatpush.msra.mxu3 %v3157_v16  ;;  %v702_v19 = vpop.f32.mrf.mxu1 }
 0x53e   :  { %v624_v17 = vpop.f32.mrf.mxu2 }
 0x53f   :  { %2484 = vmatmul.msk.f32.gmra.mxu3 %vm309_vm8, %v624_v17 }
 0x540   :  { %v705_v21 = vpop.f32.mrf.mxu1 }
 0x546   :  { %v725_v18 = vpop.f32.mrf.mxu2 }
 0x547   :  { %2491 = vmatmul.msk.f32.vlgmr.msrb.gmra.mxu3 %vm172_vm0, %v2961_v2  ;;  %2493 = vmatpush.xpose.msk.msrb.mxu0 %vm309_vm8, %v725_v18 }
 0x54a   :  { %2494 = vmatmul.msk.f32.vlgmr.msrb.gmra.mxu0 %vm309_vm8, %v702_v19 }
 0x54e   :  { %v728_v20 = vpop.f32.mrf.mxu2 }
 0x54f   :  { %2492 = vmatmul.msk.f32.gmra.mxu3 %vm172_vm0, %v2972_v9  ;;  %2495 = vmatpush.xpose.msk.msra.mxu1 %vm309_vm8, %v728_v20 }
 0x552   :  { %2496 = vmatmul.msk.f32.vlgmr.msra.gmra.mxu1 %vm309_vm8, %v705_v21 }
 0x553   :  { %899 = vmatpush.msrb.mxu1 %v3179_v36 }
 0x557   :  { %2503 = vmatmul.msk.f32.vlgmr.msra.gmra.mxu3 %vm172_vm0, %v2961_v2 }
 0x55f   :  { %2504 = vmatmul.msk.f32.gmra.mxu3 %vm172_vm0, %v2972_v9 }
 0x5b4   :  { %v3182_v37 = vpop.f32.mrf.mxu3 }
 0x5c2   :  { %v653_v39 = vpop.f32.mrf.mxu3 }
 0x5c3   :  { %v3184_v40 = vadd.f32 %v682_v38, %v653_v39 }
 0x5c7   :  { %v777_v41 = vpop.f32.mrf.mxu0 }
 0x5c8   :  { %v806_v42 = vmul.f32 0.35355338, %v777_v41 }
 0x5ca   :  { %v748_v43 = vpop.f32.mrf.mxu3  ;;  %v808_v44 = vadd.f32 %v806_v42, %v2993_v23 }
 0x5cb   :  { %850 = vmatpush.msra.mxu2 %v748_v43 }
 0x5cc   :  { %v810_v57 = vsel %vm309_vm8, %v808_v44, -inf }
 0x5cd   :  { %811 = vmax.xlane.f32.xlu0 %v810_v57  ;;  %v3196_v57 = vld [vmem:[%s3757_s4 + $0x78] sm:$0xff] }
 0x5ce   :  { %921 = vmatpush.msrb.mxu2 %v3196_v57 }
 0x5cf   :  { %v803_v59 = vpop.f32.mrf.mxu1 }
 0x5d0   :  { %v807_v60 = vmul.f32 0.35355338, %v803_v59  ;;  %v3208_v59 = vld [vmem:[%s3757_s4 + $0x68] sm:$0xff] }
 0x5d1   :  { %3806 = vst [vmem:[#allocation5_spill] sm:$0xff] %v3208_v59 }
 0x5d2   :  { %v751_v61 = vpop.f32.mrf.mxu3  ;;  %v809_v63 = vadd.f32 %v807_v60, %v2993_v23  ;;  %v3214_v60 = vld [vmem:[%s3757_s4 + $0x60] sm:$0xff] }
 0x5d3   :  { %873 = vmatpush.msra.mxu0 %v751_v61  ;;  %3807 = vst [vmem:[#allocation6_spill] sm:$0xff] %v3214_v60  ;;  %v3220_v61 = vld [vmem:[%s3759_s6 + $0x78] sm:$0xff] }
 0x5d4   :  { %v813_v0 = vsel %vm309_vm8, %v809_v63, -inf  ;;  %3808 = vst [vmem:[#allocation7_spill] sm:$0xff] %v3220_v61 }
 0x5d5   :  { %814 = vmax.xlane.f32.xlu1 %v813_v0  ;;  %967 = vmatpush.msrb.mxu0 %v3220_v61  ;;  %v3231_v0 = vld [vmem:[%s3759_s6 + $0x68] sm:$0xff] }
 0x5d6   :  { %3810 = vst [vmem:[#allocation9_spill] sm:$0xff] %v3231_v0 }
 0x5da   :  { %v949_v12 = vpop.f32.mrf.mxu3 }
 0x5db   :  { %2507 = vmatpush.xpose.msk.msra.mxu1 %vm309_vm8, %v949_v12  ;;  %v3237_v12 = vld [vmem:[%s3759_s6 + $0x60] sm:$0xff] }
 0x5dc   :  { %3811 = vst [vmem:[#allocation10_spill] sm:$0xff] %v3237_v12 }
 0x640   :  { %v812_v17 = vpop.xlane.xlu0 %811 }
 0x641   :  { %v816_v18 = vsub.f32 %v808_v44, %v812_v17  ;;  %v3202_v44 = vld [vmem:[%s3757_s4 + $0x70] sm:$0xff] }
 0x642   :  { %922 = vmatpush.msrb.mxu2 %v3202_v44 }
 0x643   :  { %v818_v19 = vmul.f32 1.442695, %v816_v18 }
 0x644   :  { %923 = vmatpush.msrb.mxu2 %v3208_v59 }
 0x645   :  { %2614 = vpow2.f32 %v818_v19 }
 0x646   :  { %924 = vmatpush.msrb.mxu2 %v3214_v60 }
 0x648   :  { %v815_v20 = vpop.xlane.xlu1 %814 }
 0x649   :  { %v817_v21 = vsub.f32 %v809_v63, %v815_v20  ;;  %v3225_v63 = vld [vmem:[%s3759_s6 + $0x70] sm:$0xff] }
 0x64a   :  { %3809 = vst [vmem:[#allocation8_spill] sm:$0xff] %v3225_v63  ;;  %968 = vmatpush.msrb.mxu0 %v3225_v63 }
 0x64b   :  { %v2615_v38 = vpop.eup %2614  ;;  %v820_v39 = vmul.f32 1.442695, %v817_v21  ;;  %v952_v21 = vpop.f32.mrf.mxu3 }
 0x64c   :  { %v822_v41 = vsel %vm309_vm8, %v2615_v38, 0.0  ;;  %969 = vmatpush.msrb.mxu0 %v3231_v0 }
 0x64d   :  { %2616 = vpow2.f32 %v820_v39  ;;  %823 = vadd.xlane.f32.xlu2 %v822_v41 }
 0x64e   :  { %970 = vmatpush.msrb.mxu0 %v3237_v12 }
 0x653   :  { %v2617_v42 = vpop.eup %2616 }
 0x654   :  { %v825_v43 = vsel %vm309_vm8, %v2617_v42, 0.0 }
 0x655   :  { %826 = vadd.xlane.f32.xlu0 %v825_v43 }
 0x6c0   :  { %v824_v17 = vpop.xlane.xlu2 %823 }
 0x6c1   :  { %2618 = vrcp.f32 %v824_v17 }
 0x6c7   :  { %v2619_v18 = vpop.eup %2618 }
 0x6c8   :  { %v830_v19 = vmul.f32 %v2619_v18, %v2615_v38  ;;  %v827_v20 = vpop.xlane.xlu0 %826 }
 0x6c9   :  { %2620 = vrcp.f32 %v827_v20 }
 0x6ca   :  { %2497 = vmatmul.msk.f32.vlgmr.msra.gmra.mxu2 %vm309_vm8, %v830_v19 }
 0x6cb   :  { %2509 = vmatpush.xpose.msk.msra.mxu2 %vm309_vm8, %v952_v21 }
 0x6cf   :  { %v2621_v39 = vpop.eup %2620 }
 0x6d0   :  { %v831_v41 = vmul.f32 %v2621_v39, %v2617_v42 }
 0x6d2   :  { %2498 = vmatmul.msk.f32.vlgmr.msra.gmra.mxu0 %vm309_vm8, %v831_v41  ;;  %2501 = vmatmul.msk.f32.vlgmr.msrb.gmra.mxu2 %vm172_vm0, %v2961_v2 }
 0x6da   :  { %2502 = vmatmul.msk.f32.gmra.mxu2 %vm172_vm0, %v2972_v9  ;;  %2505 = vmatmul.msk.f32.vlgmr.msrb.gmra.mxu0 %vm172_vm0, %v2961_v2  ;;  %v680_v2 = vadd.f32 %v3174_v22, %v3182_v37 }
 0x6e2   :  { %2506 = vmatmul.msk.f32.gmra.mxu0 %vm172_vm0, %v2972_v9 }
 0x74d   :  { %v852_v38 = vpop.f32.mrf.mxu2 }
 0x74e   :  { %2499 = vmatmul.msk.f32.vlgmr.msrb.gmra.mxu1 %vm309_vm8, %v852_v38 }
 0x74f   :  { %v875_v43 = vpop.f32.mrf.mxu0 }
 0x755   :  { %v926_v17 = vpop.f32.mrf.mxu2 }
 0x756   :  { %2500 = vmatmul.msk.f32.gmra.mxu1 %vm309_vm8, %v875_v43 }
 0x757   :  { %v972_v42 = vpop.f32.mrf.mxu0 }
 0x758   :  { %1074 = vmatpush.msrb.mxu3 %v972_v42 }
 0x75d   :  { %v929_v18 = vpop.f32.mrf.mxu2 }
 0x75e   :  { %2508 = vmatmul.msk.f32.vlgmr.msra.gmra.mxu1 %vm309_vm8, %v926_v17  ;;  %2510 = vmatmul.msk.f32.vlgmr.msra.gmra.mxu2 %vm309_vm8, %v929_v18 }
 0x75f   :  { %v975_v19 = vpop.f32.mrf.mxu0 }
 0x760   :  { %1097 = vmatpush.msra.mxu0 %v975_v19 }
 0x762   :  { %1324 = vmatpush.msrb.mxu0 %v2853_v24 }
 0x764   :  { %1325 = vmatpush.msrb.mxu0 %v2871_v27 }
 0x766   :  { %1326 = vmatpush.msrb.mxu0 %v2889_v30 }
 0x768   :  { %1327 = vmatpush.msrb.mxu0 %v2907_v33 }
 0x7cb   :  { %v901_v9 = vpop.f32.mrf.mxu1 }
 0x7cc   :  { %v907_v20 = vadd.f32 %v901_v9, %v680_v2 }
 0x7d3   :  { %v904_v21 = vpop.f32.mrf.mxu1 }
 0x7d4   :  { %v908_v39 = vadd.f32 %v904_v21, %v3184_v40 }
 0x7db   :  { %v1001_v41 = vpop.f32.mrf.mxu1 }
 0x7dc   :  { %v1030_v38 = vmul.f32 0.35355338, %v1001_v41 }
 0x7de   :  { %v1032_v43 = vadd.f32 %v1030_v38, %v2993_v23 }
 0x7e0   :  { %v1034_v24 = vsel %vm309_vm8, %v1032_v43, -inf }
 0x7e1   :  { %v1027_v17 = vpop.f32.mrf.mxu2  ;;  %1035 = vmax.xlane.f32.xlu1 %v1034_v24 }
 0x7e2   :  { %v1031_v27 = vmul.f32 0.35355338, %v1027_v17 }
 0x7e4   :  { %v1033_v30 = vadd.f32 %v1031_v27, %v2993_v23 }
 0x7e6   :  { %v1037_v33 = vsel %vm309_vm8, %v1033_v30, -inf }
 0x7e7   :  { %1038 = vmax.xlane.f32.xlu0 %v1037_v33  ;;  %v3274_v33 = vld [vmem:[%s3760_s7 + $0x18] sm:$0xff] }
 0x7e8   :  { %3812 = vst [vmem:[#allocation11_spill] sm:$0xff] %v3274_v33  ;;  %1123 = vmatpush.msrb.mxu1 %v3274_v33  ;;  %v3417_v33 = vld [vmem:[%s3766_s13 + $0x28] sm:$0xff] }
 0x7ea   :  { %1347 = vmatpush.msra.mxu1 %v2858_v25 }
 0x7ec   :  { %1348 = vmatpush.msra.mxu1 %v2876_v28 }
 0x7ee   :  { %1349 = vmatpush.msra.mxu1 %v2894_v31 }
 0x7f0   :  { %1350 = vmatpush.msra.mxu1 %v2912_v34 }
 0x854   :  { %v1036_v22 = vpop.xlane.xlu1 %1035 }
 0x855   :  { %v1040_v37 = vsub.f32 %v1032_v43, %v1036_v22 }
 0x857   :  { %v1042_v42 = vmul.f32 1.442695, %v1040_v37 }
 0x859   :  { %2622 = vpow2.f32 %v1042_v42 }
 0x85a   :  { %v1039_v18 = vpop.xlane.xlu0 %1038 }
 0x85b   :  { %v1041_v40 = vsub.f32 %v1033_v30, %v1039_v18 }
 0x85d   :  { %v1044_v19 = vmul.f32 1.442695, %v1041_v40  ;;  %v3286_v40 = vld [vmem:[%s3761_s8] ss:$0 sm:$0xff] }
 0x85e   :  { %3813 = vst [vmem:[#allocation12_spill] sm:$0xff] %v3286_v40 }
 0x85f   :  { %v2623_v2 = vpop.eup %2622  ;;  %2624 = vpow2.f32 %v1044_v19 }
 0x860   :  { %v1046_v9 = vsel %vm309_vm8, %v2623_v2, 0.0 }
 0x861   :  { %1047 = vadd.xlane.f32.xlu2 %v1046_v9 }
 0x865   :  { %v2625_v21 = vpop.eup %2624 }
 0x866   :  { %v1049_v41 = vsel %vm309_vm8, %v2625_v21, 0.0 }
 0x867   :  { %1050 = vadd.xlane.f32.xlu1 %v1049_v41 }
 0x8d4   :  { %v1048_v38 = vpop.xlane.xlu2 %1047 }
 0x8d5   :  { %2626 = vrcp.f32 %v1048_v38 }
 0x8da   :  { %v1051_v24 = vpop.xlane.xlu1 %1050 }
 0x8db   :  { %v2627_v17 = vpop.eup %2626  ;;  %2628 = vrcp.f32 %v1051_v24 }
 0x8dc   :  { %v1054_v43 = vmul.f32 %v2627_v17, %v2623_v2 }
 0x8de   :  { %2511 = vmatmul.msk.f32.vlgmr.msrb.gmra.mxu3 %vm309_vm8, %v1054_v43 }
 0x8e1   :  { %v2629_v27 = vpop.eup %2628 }
 0x8e2   :  { %v1055_v30 = vmul.f32 %v2629_v27, %v2625_v21 }
 0x8e4   :  { %2512 = vmatmul.msk.f32.vlgmr.msra.gmra.mxu0 %vm309_vm8, %v1055_v30  ;;  %v3317_v30 = vld [vmem:[%s3764_s11 + $0x18] sm:$0xff] }
 0x8e5   :  { %3814 = vst [vmem:[#allocation13_spill] sm:$0xff] %v3317_v30  ;;  %1215 = vmatpush.msrb.mxu2 %v3317_v30 }
 0x961   :  { %v1076_v22 = vpop.f32.mrf.mxu3  ;;  %v1099_v37 = vpop.f32.mrf.mxu0 }
 0x962   :  { %2513 = vmatmul.msk.f32.vlgmr.msrb.gmra.mxu1 %vm309_vm8, %v1076_v22  ;;  %v3323_v22 = vld [vmem:[%s3764_s11 + $0x10] sm:$0xff] }
 0x963   :  { %3815 = vst [vmem:[#allocation14_spill] sm:$0xff] %v3323_v22  ;;  %1216 = vmatpush.msrb.mxu2 %v3323_v22 }
 0x96a   :  { %2514 = vmatmul.msk.f32.gmra.mxu1 %vm309_vm8, %v1099_v37  ;;  %v3329_v37 = vld [vmem:[%s3764_s11 + $0x8] sm:$0xff] }
 0x96b   :  { %3816 = vst [vmem:[#allocation15_spill] sm:$0xff] %v3329_v37  ;;  %1217 = vmatpush.msrb.mxu2 %v3329_v37 }
 0x9df   :  { %v1125_v42 = vpop.f32.mrf.mxu1 }
 0x9e0   :  { %v1131_v18 = vadd.f32 %v1125_v42, %v907_v20  ;;  %v3335_v42 = vld [vmem:[%s3764_s11] sm:$0xff]  ;;  %s2408_s11 = sshll.u32 %s3772_s19, 4  ;;  %s2409_s11 = int_to_ptr.hbm [resolvable:$true] %s2408_s11 }
 0x9e1   :  { %3817 = vst [vmem:[#allocation16_spill] sm:$0xff] %v3335_v42  ;;  %1218 = vmatpush.msrb.mxu2 %v3335_v42 }
 0x9e2   :  { %v1133_v25 = vadd.f32 %v1131_v18, %v2826_v3 }
 0x9e3   :  { %1370 = vmatpush.msra.mxu2 %v2863_v26  ;;  %v3351_v26 = vld [vmem:[%s3766_s13 + $0x70] sm:$0xff] }
 0x9e4   :  { %v3290_v28 = vadd.f32 %v3286_v40, %v1133_v25 }
 0x9e5   :  { %1371 = vmatpush.msra.mxu2 %v2883_v29  ;;  %v3357_v29 = vld [vmem:[%s3766_s13 + $0x68] sm:$0xff] }
 0x9e6   :  { %v1140_v31 = vsel %vm172_vm0, %v3290_v28, 0.0 }
 0x9e7   :  { %1141 = vadd.xlane.f32.xlu2 %v1140_v31  ;;  %v1128_v34 = vpop.f32.mrf.mxu1  ;;  %1372 = vmatpush.msra.mxu2 %v2901_v32 }
 0x9e8   :  { %v1132_v19 = vadd.f32 %v1128_v34, %v908_v39  ;;  %v3346_v34 = vld [vmem:[%s3766_s13 + $0x78] sm:$0xff] }
 0x9e9   :  { %1373 = vmatpush.msra.mxu2 %v2917_v35  ;;  %1228 = vmatpush.msra.mxu3 %v3346_v34 }
 0x9ea   :  { %v1134_v2 = vadd.f32 %v1132_v19, %v2830_v5  ;;  %v3364_v19 = vld [vmem:[%s3766_s13 + $0x60] sm:$0xff] }
 0x9eb   :  { %1229 = vmatpush.msra.mxu3 %v3351_v26 }
 0x9ec   :  { %v3296_v20 = vadd.f32 %v3286_v40, %v1134_v2 }
 0x9ed   :  { %1230 = vmatpush.msra.mxu3 %v3357_v29 }
 0x9ee   :  { %v1143_v9 = vsel %vm172_vm0, %v3296_v20, 0.0 }
 0x9ef   :  { %1144 = vadd.xlane.f32.xlu1 %v1143_v9  ;;  %1231 = vmatpush.msra.mxu3 %v3364_v19 }
 0xa5a   :  { %v1142_v21 = vpop.xlane.xlu2 %1141 }
 0xa5b   :  { %v1146_v3 = vmul.f32 %v1142_v21, %v2834_v13  ;;  %v3370_v21 = vld [vmem:[%s3766_s13 + $0x58] sm:$0xff] }
 0xa5c   :  { %1232 = vmatpush.msra.mxu3 %v3370_v21 }
 0xa5d   :  { %v3302_v41 = vsub.f32 %v3290_v28, %v1146_v3 }
 0xa5f   :  { %v1150_v38 = vmul.f32 %v3302_v41, %v3302_v41 }
 0xa61   :  { %v1152_v39 = vsel %vm172_vm0, %v1150_v38, 0.0  ;;  %v3376_v38 = vld [vmem:[%s3766_s13 + $0x50] sm:$0xff] }
 0xa62   :  { %1153 = vadd.xlane.f32.xlu0 %v1152_v39  ;;  %v1145_v5 = vpop.xlane.xlu1 %1144  ;;  %1233 = vmatpush.msra.mxu3 %v3376_v38 }
 0xa63   :  { %v1147_v24 = vmul.f32 %v1145_v5, %v2834_v13  ;;  %v3382_v5 = vld [vmem:[%s3766_s13 + $0x48] sm:$0xff] }
 0xa64   :  { %1234 = vmatpush.msra.mxu3 %v3382_v5 }
 0xa65   :  { %v3309_v17 = vsub.f32 %v3296_v20, %v1147_v24 }
 0xa67   :  { %v1151_v43 = vmul.f32 %v3309_v17, %v3309_v17 }
 0xa69   :  { %v1155_v27 = vsel %vm172_vm0, %v1151_v43, 0.0  ;;  %v3388_v43 = vld [vmem:[%s3766_s13 + $0x40] sm:$0xff] }
 0xa6a   :  { %1156 = vadd.xlane.f32.xlu2 %v1155_v27  ;;  %1235 = vmatpush.msra.mxu3 %v3388_v43 }
 0xad5   :  { %v1154_v18 = vpop.xlane.xlu0 %1153 }
 0xad6   :  { %v1158_v25 = vmul.f32 %v1154_v18, %v2834_v13 }
 0xad8   :  { %v1160_v31 = vadd.f32 1e-05, %v1158_v25  ;;  %v3394_v25 = vld [vmem:[%s3766_s13 + $0x38] sm:$0xff] }
 0xad9   :  { %1236 = vmatpush.msra.mxu3 %v3394_v25 }
 0xada   :  { %2630 = vrsqrt.f32 %v1160_v31  ;;  %vm1168_vm11 = vweird.f32 %v1160_v31 }
 0xadd   :  { %v1157_v32 = vpop.xlane.xlu2 %1156 }
 0xade   :  { %v1159_v35 = vmul.f32 %v1157_v32, %v2834_v13 }
 0xae0   :  { %v2631_v2 = vpop.eup %2630  ;;  %v1161_v9 = vadd.f32 1e-05, %v1159_v35 }
 0xae1   :  { %v1163_v3 = vmul.f32 %v2631_v2, %v1160_v31  ;;  %vm1169_vm10 = vweird.f32 %v2631_v2 }
 0xae2   :  { %2632 = vrsqrt.f32 %v1161_v9  ;;  %vm1170_vm12 = vmor %vm1168_vm11, %vm1169_vm10  ;;  %vm1178_vm14 = vweird.f32 %v1161_v9 }
 0xae3   :  { %v1164_v39 = vmul.f32 %v2631_v2, %v1163_v3  ;;  %v3400_v3 = vld [vmem:[%s3762_s9] ss:$0 sm:$0xff] }
 0xae4   :  { %3818 = vst [vmem:[#allocation17_spill] sm:$0xff] %v3400_v3 }
 0xae5   :  { %v1165_v24 = vmul.f32 0.5, %v1164_v39  ;;  %v3405_v39 = vld [vmem:[%s3766_s13 + $0x30] sm:$0xff] }
 0xae6   :  { %1237 = vmatpush.msra.mxu3 %v3405_v39 }
 0xae7   :  { %v1166_v27 = vsub.f32 1.5, %v1165_v24 }
 0xae8   :  { %v2633_v18 = vpop.eup %2632  ;;  %1238 = vmatpush.msra.mxu3 %v3417_v33 }
 0xae9   :  { %v1167_v32 = vmul.f32 %v2631_v2, %v1166_v27  ;;  %v1173_v35 = vmul.f32 %v2633_v18, %v1161_v9  ;;  %v3412_v27 = vld [vmem:[%s3763_s10] ss:$0 sm:$0xff]  ;;  %vm1179_vm13 = vweird.f32 %v2633_v18  ;;  %v3443_v9 = vld [vmem:[%s3766_s13 + $0x10] sm:$0xff] }
 0xaea   :  { %3819 = vst [vmem:[#allocation18_spill] sm:$0xff] %v3412_v27  ;;  %vm1180_vm15 = vmor %vm1178_vm14, %vm1179_vm13 }
 0xaeb   :  { %v1171_v24 = vsel %vm1170_vm12, %v2631_v2, %v1167_v32  ;;  %v1174_v40 = vmul.f32 %v2633_v18, %v1173_v35  ;;  %v3424_v32 = vld [vmem:[%s3766_s13 + $0x20] sm:$0xff] }
 0xaec   :  { %v1182_v31 = vmul.f32 %v1171_v24, %v3302_v41  ;;  %v3431_v24 = vld [vmem:[%s3766_s13 + $0x18] sm:$0xff]  ;;  %1239 = vmatpush.msra.mxu3 %v3424_v32 }
 0xaed   :  { %v1175_v42 = vmul.f32 0.5, %v1174_v40 }
 0xaee   :  { %v1187_v2 = vmul.f32 %v3400_v3, %v1182_v31  ;;  %1240 = vmatpush.msra.mxu3 %v3431_v24 }
 0xaef   :  { %v1176_v41 = vsub.f32 1.5, %v1175_v42 }
 0xaf0   :  { %v1192_v35 = vadd.f32 %v3412_v27, %v1187_v2  ;;  %1241 = vmatpush.msra.mxu3 %v3443_v9 }
 0xaf1   :  { %v1177_v40 = vmul.f32 %v2633_v18, %v1176_v41 }
 0xaf2   :  { %2515 = vmatmul.msk.f32.vlgmr.msrb.gmra.mxu2 %vm172_vm0, %v1192_v35 }
 0xaf3   :  { %v1181_v31 = vsel %vm1180_vm15, %v2633_v18, %v1177_v40  ;;  %v3449_v18 = vld [vmem:[%s3766_s13 + $0x8] sm:$0xff] }
 0xaf4   :  { %v1183_v42 = vmul.f32 %v1181_v31, %v3309_v17  ;;  %1242 = vmatpush.msra.mxu3 %v3449_v18  ;;  %v3455_v17 = vld [vmem:[%s3766_s13] sm:$0xff] }
 0xaf6   :  { %v1188_v37 = vmul.f32 %v3400_v3, %v1183_v42  ;;  %1243 = vmatpush.msra.mxu3 %v3455_v17 }
 0xaf8   :  { %v1193_v2 = vadd.f32 %v3412_v27, %v1188_v37  ;;  %v3461_v37 = vld [vmem:[%s3765_s12] ss:$0 sm:$0xff] }
 0xaf9   :  { %3820 = vst [vmem:[#allocation19_spill] sm:$0xff] %v3461_v37  ;;  %v3468_v27 = vld [vmem:[%s3821_s24] ss:$0 sm:$0xff] }
 0xafa   :  { %2516 = vmatmul.msk.f32.gmra.mxu2 %vm172_vm0, %v1193_v2  ;;  %3822 = vst [vmem:[#allocation20_spill] sm:$0xff] %v3468_v27 }
 0xb75   :  { %v1220_v41 = vpop.f32.mrf.mxu2 }
 0xb76   :  { %v1221_v35 = vadd.f32 %v3461_v37, %v1220_v41 }
 0xb78   :  { %v1226_v40 = vmax.f32 %v1221_v35, 0.0 }
 0xb7a   :  { %1244 = vmatmul.f32.vlgmr.msra.gmra.mxu3 %v1226_v40 }
 0xb7d   :  { %v1223_v31 = vpop.f32.mrf.mxu2 }
 0xb7e   :  { %v1224_v42 = vadd.f32 %v3461_v37, %v1223_v31 }
 0xb80   :  { %v1227_v2 = vmax.f32 %v1224_v42, 0.0 }
 0xb82   :  { %1247 = vmatmul.f32.gmra.mxu3 %v1227_v2 }
 0xbfd   :  { %v1245_v3 = vpop.f32.mrf.mxu3 }
 0xbfe   :  { %v1251_v22 = vadd.f32 %v1245_v3, %v3290_v28 }
 0xc00   :  { %v3472_v30 = vadd.f32 %v3468_v27, %v1251_v22 }
 0xc02   :  { %3823 = vst [vmem:[#allocation21_spill] sm:$0xff] %v3472_v30  ;;  %v1258_v41 = vsel %vm172_vm0, %v3472_v30, 0.0 }
 0xc03   :  { %1259 = vadd.xlane.f32.xlu0 %v1258_v41 }
 0xc05   :  { %v1248_v35 = vpop.f32.mrf.mxu3 }
 0xc06   :  { %v1252_v40 = vadd.f32 %v1248_v35, %v3296_v20 }
 0xc08   :  { %v3478_v31 = vadd.f32 %v3468_v27, %v1252_v40 }
 0xc0a   :  { %3824 = vst [vmem:[#allocation22_spill] sm:$0xff] %v3478_v31  ;;  %v1261_v42 = vsel %vm172_vm0, %v3478_v31, 0.0 }
 0xc0b   :  { %1262 = vadd.xlane.f32.xlu2 %v1261_v42 }
 0xc76   :  { %v1260_v2 = vpop.xlane.xlu0 %1259 }
 0xc77   :  { %v1264_v28 = vmul.f32 %v1260_v2, %v2834_v13 }
 0xc79   :  { %v1266_v22 = vsub.f32 %v3472_v30, %v1264_v28 }
 0xc7b   :  { %v1268_v3 = vmul.f32 %v1266_v22, %v1266_v22 }
 0xc7d   :  { %v1270_v37 = vsel %vm172_vm0, %v1268_v3, 0.0 }
 0xc7e   :  { %1271 = vadd.xlane.f32.xlu1 %v1270_v37  ;;  %v1263_v41 = vpop.xlane.xlu2 %1262 }
 0xc7f   :  { %v1265_v12 = vmul.f32 %v1263_v41, %v2834_v13 }
 0xc81   :  { %v1267_v20 = vsub.f32 %v3478_v31, %v1265_v12 }
 0xc83   :  { %v1269_v35 = vmul.f32 %v1267_v20, %v1267_v20 }
 0xc85   :  { %v1273_v40 = vsel %vm172_vm0, %v1269_v35, 0.0 }
 0xc86   :  { %1274 = vadd.xlane.f32.xlu0 %v1273_v40 }
 0xcf1   :  { %v1272_v27 = vpop.xlane.xlu1 %1271 }
 0xcf2   :  { %v1276_v42 = vmul.f32 %v1272_v27, %v2834_v13 }
 0xcf4   :  { %v1278_v0 = vadd.f32 1e-05, %v1276_v42 }
 0xcf6   :  { %2634 = vrsqrt.f32 %v1278_v0  ;;  %vm1286_vm2 = vweird.f32 %v1278_v0 }
 0xcf9   :  { %v1275_v2 = vpop.xlane.xlu0 %1274 }
 0xcfa   :  { %v1277_v28 = vmul.f32 %v1275_v2, %v2834_v13 }
 0xcfc   :  { %v2635_v30 = vpop.eup %2634  ;;  %v1279_v3 = vadd.f32 1e-05, %v1277_v28 }
 0xcfd   :  { %v1281_v37 = vmul.f32 %v2635_v30, %v1278_v0  ;;  %vm1287_vm1 = vweird.f32 %v2635_v30 }
 0xcfe   :  { %2636 = vrsqrt.f32 %v1279_v3  ;;  %vm1288_vm3 = vmor %vm1286_vm2, %vm1287_vm1  ;;  %vm1296_vm5 = vweird.f32 %v1279_v3 }
 0xcff   :  { %v1282_v63 = vmul.f32 %v2635_v30, %v1281_v37 }
 0xd01   :  { %v1283_v41 = vmul.f32 0.5, %v1282_v63 }
 0xd03   :  { %v1284_v61 = vsub.f32 1.5, %v1283_v41  ;;  %v2681_v41 = vld [vmem:[%s3757_s4 + $0x30] sm:$0xff] }
 0xd04   :  { %v2637_v12 = vpop.eup %2636 }
 0xd05   :  { %v1285_v31 = vmul.f32 %v2635_v30, %v1284_v61  ;;  %v1291_v35 = vmul.f32 %v2637_v12, %v1279_v3  ;;  %vm1297_vm4 = vweird.f32 %v2637_v12  ;;  %v2680_v3 = vld [vmem:[%s3758_s5 + $0x30] sm:$0xff] }
 0xd06   :  { %vm1298_vm6 = vmor %vm1296_vm5, %vm1297_vm4 }
 0xd07   :  { %v1289_v40 = vsel %vm1288_vm3, %v2635_v30, %v1285_v31  ;;  %v1292_v27 = vmul.f32 %v2637_v12, %v1291_v35 }
 0xd08   :  { %v1300_v42 = vmul.f32 %v1289_v40, %v1266_v22  ;;  %v2679_v22 = vld [vmem:[%s3757_s4 + $0x38] sm:$0xff]  ;;  %v2683_v40 = vld [vmem:[%s3757_s4 + $0x28] sm:$0xff] }
 0xd09   :  { %v1293_v60 = vmul.f32 0.5, %v1292_v27  ;;  %v2684_v27 = vld [vmem:[%s3758_s5 + $0x20] sm:$0xff] }
 0xd0a   :  { %v1302_v59 = vmul.f32 %v2951_v58, %v1300_v42  ;;  %v2685_v42 = vld [vmem:[%s3757_s4 + $0x20] sm:$0xff] }
 0xd0b   :  { %v1294_v2 = vsub.f32 1.5, %v1293_v60 }
 0xd0c   :  { %v3492_v28 = vadd.f32 %v2957_v62, %v1302_v59 }
 0xd0d   :  { %v1295_v37 = vmul.f32 %v2637_v12, %v1294_v2 }
 0xd0e   :  { %2517 = vmatmul.msk.f32.vlgmr.msrb.gmra.mxu0 %vm172_vm0, %v3492_v28  ;;  %2519 = vmatmul.msk.f32.vlgmr.msra.gmra.mxu1 %vm172_vm0, %v3492_v28 }
 0xd0f   :  { %v1299_v61 = vsel %vm1298_vm6, %v2637_v12, %v1295_v37  ;;  %2521 = vmatmul.msk.f32.vlgmr.msra.gmra.mxu2 %vm172_vm0, %v3492_v28  ;;  %v2682_v12 = vld [vmem:[%s3758_s5 + $0x28] sm:$0xff] }
 0xd10   :  { %v1301_v63 = vmul.f32 %v1299_v61, %v1267_v20 }
 0xd12   :  { %v1303_v60 = vmul.f32 %v2951_v58, %v1301_v63 }
 0xd14   :  { %v3502_v0 = vadd.f32 %v2957_v62, %v1303_v60  ;;  %v2678_v62 = vld [vmem:[%s3758_s5 + $0x38] sm:$0xff] }
 0xd16   :  { %2518 = vmatmul.msk.f32.gmra.mxu0 %vm172_vm0, %v3502_v0  ;;  %2520 = vmatmul.msk.f32.gmra.mxu1 %vm172_vm0, %v3502_v0 }
 0xd17   :  { %2522 = vmatmul.msk.f32.gmra.mxu2 %vm172_vm0, %v3502_v0 }
 0xd8b   :  { %v1352_v59 = vpop.f32.mrf.mxu1  ;;  %v1329_v30 = vpop.f32.mrf.mxu0 }
 0xd8c   :  { %2523 = vmatpush.xpose.msk.msra.mxu0 %vm309_vm8, %v1352_v59 }
 0xd8f   :  { %2524 = vmatmul.msk.f32.vlgmr.msra.gmra.mxu0 %vm309_vm8, %v1329_v30 }
 0xd92   :  { %v1375_v31 = vpop.f32.mrf.mxu2 }
 0xd93   :  { %1477 = vmatpush.msrb.mxu1 %v1375_v31  ;;  %v1355_v58 = vpop.f32.mrf.mxu1  ;;  %v1332_v20 = vpop.f32.mrf.mxu0 }
 0xd94   :  { %2525 = vmatpush.xpose.msk.msrb.mxu0 %vm309_vm8, %v1355_v58 }
 0xd95   :  { %1540 = vmatpush.msra.mxu1 %v2678_v62 }
 0xd97   :  { %1541 = vmatpush.msra.mxu1 %v2680_v3  ;;  %2526 = vmatmul.msk.f32.vlgmr.msrb.gmra.mxu0 %vm309_vm8, %v1332_v20 }
 0xd98   :  { %1517 = vmatpush.msra.mxu0 %v2679_v22 }
 0xd99   :  { %1542 = vmatpush.msra.mxu1 %v2682_v12 }
 0xd9a   :  { %1518 = vmatpush.msra.mxu0 %v2681_v41  ;;  %v1378_v35 = vpop.f32.mrf.mxu2 }
 0xd9b   :  { %1543 = vmatpush.msra.mxu1 %v2684_v27  ;;  %1500 = vmatpush.msrb.mxu2 %v1378_v35 }
 0xd9c   :  { %1519 = vmatpush.msra.mxu0 %v2683_v40 }
 0xd9d   :  { %1563 = vmatpush.msra.mxu2 %v3004_v53 }
 0xd9e   :  { %1520 = vmatpush.msra.mxu0 %v2685_v42 }
 0xd9f   :  { %1564 = vmatpush.msra.mxu2 %v3009_v54  ;;  %2529 = vmatmul.msk.f32.vlgmr.msra.gmra.mxu0 %vm172_vm0, %v3492_v28 }
 0xda1   :  { %1565 = vmatpush.msra.mxu2 %v3015_v55 }
 0xda3   :  { %1566 = vmatpush.msra.mxu2 %v3021_v56 }
 0xda7   :  { %2530 = vmatmul.msk.f32.gmra.mxu0 %vm172_vm0, %v3502_v0 }
 0xe0c   :  { %v1404_v2 = vpop.f32.mrf.mxu0 }
 0xe0d   :  { %v1433_v37 = vmul.f32 0.35355338, %v1404_v2 }
 0xe0f   :  { %v1435_v61 = vadd.f32 %v1433_v37, %v2993_v23 }
 0xe11   :  { %v1437_v63 = vsel %vm309_vm8, %v1435_v61, -inf }
 0xe12   :  { %1438 = vmax.xlane.f32.xlu1 %v1437_v63 }
 0xe14   :  { %v1430_v53 = vpop.f32.mrf.mxu0 }
 0xe15   :  { %v1434_v60 = vmul.f32 0.35355338, %v1430_v53 }
 0xe17   :  { %v1436_v54 = vadd.f32 %v1434_v60, %v2993_v23 }
 0xe19   :  { %v1440_v59 = vsel %vm309_vm8, %v1436_v54, -inf }
 0xe1a   :  { %1441 = vmax.xlane.f32.xlu0 %v1440_v59 }
 0xe85   :  { %v1439_v55 = vpop.xlane.xlu1 %1438 }
 0xe86   :  { %v1443_v30 = vsub.f32 %v1435_v61, %v1439_v55 }
 0xe88   :  { %v1445_v56 = vmul.f32 1.442695, %v1443_v30 }
 0xe8a   :  { %2638 = vpow2.f32 %v1445_v56 }
 0xe8d   :  { %v1442_v31 = vpop.xlane.xlu0 %1441 }
 0xe8e   :  { %v1444_v58 = vsub.f32 %v1436_v54, %v1442_v31 }
 0xe90   :  { %v2639_v62 = vpop.eup %2638  ;;  %v1447_v22 = vmul.f32 1.442695, %v1444_v58 }
 0xe91   :  { %v1449_v20 = vsel %vm309_vm8, %v2639_v62, 0.0 }
 0xe92   :  { %2640 = vpow2.f32 %v1447_v22  ;;  %1450 = vadd.xlane.f32.xlu2 %v1449_v20 }
 0xe98   :  { %v2641_v3 = vpop.eup %2640 }
 0xe99   :  { %v1452_v41 = vsel %vm309_vm8, %v2641_v3, 0.0 }
 0xe9a   :  { %1453 = vadd.xlane.f32.xlu1 %v1452_v41 }
 0xf05   :  { %v1451_v12 = vpop.xlane.xlu2 %1450 }
 0xf06   :  { %2642 = vrcp.f32 %v1451_v12 }
 0xf0c   :  { %v2643_v35 = vpop.eup %2642 }
 0xf0d   :  { %v1457_v40 = vmul.f32 %v2643_v35, %v2639_v62  ;;  %v1454_v27 = vpop.xlane.xlu1 %1453 }
 0xf0e   :  { %2644 = vrcp.f32 %v1454_v27 }
 0xf0f   :  { %2527 = vmatmul.msk.f32.vlgmr.msrb.gmra.mxu1 %vm309_vm8, %v1457_v40 }
 0xf14   :  { %v2645_v42 = vpop.eup %2644 }
 0xf15   :  { %v1458_v2 = vmul.f32 %v2645_v42, %v2641_v3 }
 0xf17   :  { %2528 = vmatmul.msk.f32.vlgmr.msrb.gmra.mxu2 %vm309_vm8, %v1458_v2  ;;  %2531 = vmatmul.msk.f32.vlgmr.msra.gmra.mxu1 %vm172_vm0, %v3492_v28  ;;  %v3830_v2 = vld [vmem:[#allocation10_spill] sm:$0xff] }
 0xf18   :  { %1719 = vmatpush.msrb.mxu2 %v3109_v1  ;;  %v1522_v1 = vpop.f32.mrf.mxu0 }
 0xf1f   :  { %2532 = vmatmul.msk.f32.gmra.mxu1 %vm172_vm0, %v3502_v0  ;;  %2533 = vmatmul.msk.f32.vlgmr.msra.gmra.mxu2 %vm172_vm0, %v3492_v28 }
 0xf20   :  { %1814 = vmatpush.msra.mxu2 %v3115_v4  ;;  %v1525_v4 = vpop.f32.mrf.mxu0 }
 0xf22   :  { %1815 = vmatpush.msra.mxu2 %v3120_v6 }
 0xf24   :  { %1816 = vmatpush.msra.mxu2 %v3126_v8 }
 0xf26   :  { %1817 = vmatpush.msra.mxu2 %v3133_v10 }
 0xf27   :  { %2534 = vmatmul.msk.f32.gmra.mxu2 %vm172_vm0, %v3502_v0 }
 0xf8c   :  { %v1479_v37 = vpop.f32.mrf.mxu1 }
 0xf94   :  { %v1545_v61 = vpop.f32.mrf.mxu1 }
 0xf95   :  { %2535 = vmatpush.xpose.msk.msrb.mxu3 %vm309_vm8, %v1545_v61 }
 0xf98   :  { %2536 = vmatmul.msk.f32.vlgmr.msrb.gmra.mxu3 %vm309_vm8, %v1522_v1 }
 0xf9a   :  { %v1502_v63 = vpop.f32.mrf.mxu2 }
 0xf9c   :  { %v1548_v53 = vpop.f32.mrf.mxu1 }
 0xf9d   :  { %2537 = vmatpush.xpose.msk.msra.mxu3 %vm309_vm8, %v1548_v53 }
 0xfa0   :  { %2538 = vmatmul.msk.f32.vlgmr.msra.gmra.mxu3 %vm309_vm8, %v1525_v4 }
 0xfa1   :  { %1748 = vmatpush.msrb.mxu3 %v3037_v7 }
 0xfa2   :  { %v1568_v6 = vpop.f32.mrf.mxu2 }
 0xfa3   :  { %1670 = vmatpush.msrb.mxu0 %v1568_v6 }
 0xfa5   :  { %1768 = vmatpush.msra.mxu0 %v3051_v45 }
 0xfa7   :  { %1769 = vmatpush.msra.mxu0 %v3057_v46 }
 0xfa8   :  { %2543 = vmatmul.msk.f32.vlgmr.msrb.gmra.mxu3 %vm309_vm8, %v1479_v37 }
 0xfa9   :  { %1770 = vmatpush.msra.mxu0 %v3063_v47 }
 0xfaa   :  { %v1571_v8 = vpop.f32.mrf.mxu2 }
 0xfab   :  { %1771 = vmatpush.msra.mxu0 %v3069_v48  ;;  %1693 = vmatpush.msrb.mxu1 %v1571_v8 }
 0xfad   :  { %1791 = vmatpush.msra.mxu1 %v3075_v49 }
 0xfaf   :  { %1792 = vmatpush.msra.mxu1 %v3080_v50 }
 0xfb0   :  { %2544 = vmatmul.msk.f32.gmra.mxu3 %vm309_vm8, %v1502_v63 }
 0xfb1   :  { %1793 = vmatpush.msra.mxu1 %v3086_v51 }
 0xfb3   :  { %1794 = vmatpush.msra.mxu1 %v3092_v52 }
0x101b   :  { %v1597_v7 = vpop.f32.mrf.mxu3 }
0x101c   :  { %v1626_v45 = vmul.f32 0.35355338, %v1597_v7 }
0x101e   :  { %v1628_v46 = vadd.f32 %v1626_v45, %v2993_v23 }
0x1020   :  { %v1630_v47 = vsel %vm309_vm8, %v1628_v46, -inf }
0x1021   :  { %1631 = vmax.xlane.f32.xlu0 %v1630_v47 }
0x1023   :  { %v1623_v10 = vpop.f32.mrf.mxu3 }
0x1024   :  { %v1627_v48 = vmul.f32 0.35355338, %v1623_v10 }
0x1026   :  { %v1629_v60 = vadd.f32 %v1627_v48, %v2993_v23 }
0x1028   :  { %v1633_v49 = vsel %vm309_vm8, %v1629_v60, -inf }
0x1029   :  { %1634 = vmax.xlane.f32.xlu2 %v1633_v49 }
0x1094   :  { %v1632_v50 = vpop.xlane.xlu0 %1631 }
0x1095   :  { %v1636_v54 = vsub.f32 %v1628_v46, %v1632_v50 }
0x1097   :  { %v1638_v59 = vmul.f32 1.442695, %v1636_v54  ;;  %v3831_v54 = vld [vmem:[#allocation13_spill] sm:$0xff] }
0x1099   :  { %2646 = vpow2.f32 %v1638_v59  ;;  %v3832_v59 = vld [vmem:[#allocation14_spill] sm:$0xff] }
0x109c   :  { %v1635_v51 = vpop.xlane.xlu2 %1634 }
0x109d   :  { %v1637_v52 = vsub.f32 %v1629_v60, %v1635_v51  ;;  %v3833_v51 = vld [vmem:[#allocation15_spill] sm:$0xff] }
0x109f   :  { %v2647_v55 = vpop.eup %2646  ;;  %v1640_v30 = vmul.f32 1.442695, %v1637_v52  ;;  %v3834_v52 = vld [vmem:[#allocation16_spill] sm:$0xff] }
0x10a0   :  { %v1642_v56 = vsel %vm309_vm8, %v2647_v55, 0.0 }
0x10a1   :  { %2648 = vpow2.f32 %v1640_v30  ;;  %1643 = vadd.xlane.f32.xlu2 %v1642_v56 }
0x10a7   :  { %v2649_v31 = vpop.eup %2648 }
0x10a8   :  { %v1645_v58 = vsel %vm309_vm8, %v2649_v31, 0.0 }
0x10a9   :  { %1646 = vadd.xlane.f32.xlu1 %v1645_v58  ;;  %v3835_v58 = vld [vmem:[#allocation11_spill] sm:$0xff] }
0x1114   :  { %v1644_v62 = vpop.xlane.xlu2 %1643 }
0x1115   :  { %2650 = vrcp.f32 %v1644_v62 }
0x111b   :  { %v2651_v22 = vpop.eup %2650 }
0x111c   :  { %v1650_v20 = vmul.f32 %v2651_v22, %v2647_v55  ;;  %v1647_v3 = vpop.xlane.xlu1 %1646 }
0x111d   :  { %2652 = vrcp.f32 %v1647_v3 }
0x111e   :  { %2539 = vmatmul.msk.f32.vlgmr.msrb.gmra.mxu0 %vm309_vm8, %v1650_v20 }
0x1123   :  { %v2653_v41 = vpop.eup %2652 }
0x1124   :  { %v1651_v12 = vmul.f32 %v2653_v41, %v2649_v31 }
0x1126   :  { %2540 = vmatmul.msk.f32.vlgmr.msrb.gmra.mxu1 %vm309_vm8, %v1651_v12  ;;  %2545 = vmatmul.msk.f32.vlgmr.msra.gmra.mxu0 %vm172_vm0, %v3492_v28 }
0x112e   :  { %2546 = vmatmul.msk.f32.gmra.mxu0 %vm172_vm0, %v3502_v0  ;;  %2547 = vmatmul.msk.f32.vlgmr.msra.gmra.mxu1 %vm172_vm0, %v3492_v28 }
0x1136   :  { %2548 = vmatmul.msk.f32.gmra.mxu1 %vm172_vm0, %v3502_v0 }
0x119b   :  { %v1672_v35 = vpop.f32.mrf.mxu0 }
0x119c   :  { %2541 = vmatmul.msk.f32.vlgmr.msrb.gmra.mxu2 %vm309_vm8, %v1672_v35 }
0x119d   :  { %2015 = vmatpush.msrb.mxu2 %v3139_v11 }
0x119f   :  { %2016 = vmatpush.msrb.mxu2 %v3146_v14 }
0x11a1   :  { %2017 = vmatpush.msrb.mxu2 %v3151_v15  ;;  %v3633_v15 = vpop.f32.mrf.mxu3 }
0x11a3   :  { %v1695_v40 = vpop.f32.mrf.mxu1  ;;  %2018 = vmatpush.msrb.mxu2 %v3157_v16  ;;  %v1773_v42 = vpop.f32.mrf.mxu0 }
0x11a4   :  { %2542 = vmatmul.msk.f32.gmra.mxu2 %vm309_vm8, %v1695_v40 }
0x11ab   :  { %v1796_v27 = vpop.f32.mrf.mxu1  ;;  %v1776_v14 = vpop.f32.mrf.mxu0 }
0x11ac   :  { %2549 = vmatmul.msk.f32.vlgmr.msra.gmra.mxu2 %vm172_vm0, %v3492_v28  ;;  %2551 = vmatpush.xpose.msk.msra.mxu3 %vm309_vm8, %v1796_v27 }
0x11ad   :  { %2287 = vmatpush.msra.mxu2 %v3346_v34 }
0x11af   :  { %2552 = vmatmul.msk.f32.vlgmr.msra.gmra.mxu3 %vm309_vm8, %v1773_v42  ;;  %2288 = vmatpush.msra.mxu2 %v3351_v26 }
0x11b1   :  { %2289 = vmatpush.msra.mxu2 %v3357_v29 }
0x11b3   :  { %v1799_v11 = vpop.f32.mrf.mxu1  ;;  %2290 = vmatpush.msra.mxu2 %v3364_v19 }
0x11b4   :  { %2550 = vmatmul.msk.f32.gmra.mxu2 %vm172_vm0, %v3502_v0  ;;  %2553 = vmatpush.xpose.msk.msrb.mxu0 %vm309_vm8, %v1799_v11 }
0x11b5   :  { %2291 = vmatpush.msra.mxu2 %v3370_v21 }
0x11b7   :  { %2554 = vmatmul.msk.f32.vlgmr.msrb.gmra.mxu0 %vm309_vm8, %v1776_v14  ;;  %2292 = vmatpush.msra.mxu2 %v3376_v38 }
0x11b8   :  { %1970 = vmatpush.msra.mxu0 %v3179_v36  ;;  %v1753_v36 = vpop.f32.mrf.mxu3 }
0x11b9   :  { %2293 = vmatpush.msra.mxu2 %v3382_v5 }
0x11bb   :  { %2294 = vmatpush.msra.mxu2 %v3388_v43  ;;  %v3825_v43 = vld [vmem:[#allocation5_spill] sm:$0xff] }
0x11bc   :  { %2561 = vmatmul.msk.f32.vlgmr.msrb.gmra.mxu2 %vm172_vm0, %v3492_v28 }
0x11bd   :  { %2295 = vmatpush.msra.mxu2 %v3394_v25 }
0x11bf   :  { %2296 = vmatpush.msra.mxu2 %v3405_v39 }
0x11c1   :  { %2297 = vmatpush.msra.mxu2 %v3417_v33 }
0x11c3   :  { %2298 = vmatpush.msra.mxu2 %v3424_v32 }
0x11c4   :  { %2562 = vmatmul.msk.f32.gmra.mxu2 %vm172_vm0, %v3502_v0 }
0x11c5   :  { %2299 = vmatpush.msra.mxu2 %v3431_v24  ;;  %v3826_v24 = vld [vmem:[#allocation6_spill] sm:$0xff] }
0x11c7   :  { %2300 = vmatpush.msra.mxu2 %v3443_v9  ;;  %v3827_v9 = vld [vmem:[#allocation7_spill] sm:$0xff] }
0x11c9   :  { %2301 = vmatpush.msra.mxu2 %v3449_v18  ;;  %v3829_v18 = vld [vmem:[#allocation9_spill] sm:$0xff] }
0x11cb   :  { %2302 = vmatpush.msra.mxu2 %v3455_v17 }
0x121f   :  { %v3635_v16 = vpop.f32.mrf.mxu2 }
0x1227   :  { %v1724_v34 = vpop.f32.mrf.mxu2 }
0x1228   :  { %v3637_v33 = vadd.f32 %v1753_v36, %v1724_v34 }
0x122f   :  { %v1819_v26 = vpop.f32.mrf.mxu2 }
0x1230   :  { %1921 = vmatpush.msrb.mxu1 %v1819_v26 }
0x1232   :  { %1992 = vmatpush.msra.mxu1 %v3196_v57  ;;  %v1848_v29 = vpop.f32.mrf.mxu3 }
0x1233   :  { %v1877_v19 = vmul.f32 0.35355338, %v1848_v29 }
0x1234   :  { %1993 = vmatpush.msra.mxu1 %v3202_v44  ;;  %v1874_v21 = vpop.f32.mrf.mxu0  ;;  %v3828_v44 = vld [vmem:[#allocation8_spill] sm:$0xff] }
0x1235   :  { %v1878_v38 = vmul.f32 0.35355338, %v1874_v21  ;;  %v1879_v5 = vadd.f32 %v1877_v19, %v2993_v23 }
0x1236   :  { %1994 = vmatpush.msra.mxu1 %v3825_v43 }
0x1237   :  { %v1822_v25 = vpop.f32.mrf.mxu2  ;;  %v1881_v39 = vsel %vm309_vm8, %v1879_v5, -inf  ;;  %v1880_v32 = vadd.f32 %v1878_v38, %v2993_v23 }
0x1238   :  { %1995 = vmatpush.msra.mxu1 %v3826_v24  ;;  %1882 = vmax.xlane.f32.xlu0 %v1881_v39 }
0x1239   :  { %1944 = vmatpush.msrb.mxu3 %v1822_v25  ;;  %v1884_v57 = vsel %vm309_vm8, %v1880_v32, -inf }
0x123a   :  { %1885 = vmax.xlane.f32.xlu1 %v1884_v57 }
0x123b   :  { %2038 = vmatpush.msra.mxu3 %v3827_v9 }
0x123d   :  { %2039 = vmatpush.msra.mxu3 %v3828_v44 }
0x123f   :  { %2040 = vmatpush.msra.mxu3 %v3829_v18  ;;  %v2020_v17 = vpop.f32.mrf.mxu2 }
0x1240   :  { %2565 = vmatpush.xpose.msk.msrb.mxu0 %vm309_vm8, %v2020_v17  ;;  %v3836_v17 = vld [vmem:[#allocation21_spill] sm:$0xff] }
0x1241   :  { %2041 = vmatpush.msra.mxu3 %v3830_v2 }
0x1247   :  { %v2023_v49 = vpop.f32.mrf.mxu2 }
0x12ab   :  { %v1883_v37 = vpop.xlane.xlu0 %1882 }
0x12ac   :  { %v1887_v61 = vsub.f32 %v1879_v5, %v1883_v37  ;;  %v3837_v37 = vld [vmem:[#allocation12_spill] sm:$0xff] }
0x12ad   :  { %v1886_v1 = vpop.xlane.xlu1 %1885 }
0x12ae   :  { %v1889_v63 = vmul.f32 1.442695, %v1887_v61  ;;  %v1888_v53 = vsub.f32 %v1880_v32, %v1886_v1 }
0x12b0   :  { %2654 = vpow2.f32 %v1889_v63  ;;  %v1891_v4 = vmul.f32 1.442695, %v1888_v53 }
0x12b2   :  { %2656 = vpow2.f32 %v1891_v4  ;;  %v3838_v4 = vld [vmem:[#allocation22_spill] sm:$0xff] }
0x12b6   :  { %v2655_v6 = vpop.eup %2654 }
0x12b7   :  { %v1893_v8 = vsel %vm309_vm8, %v2655_v6, 0.0 }
0x12b8   :  { %v2657_v7 = vpop.eup %2656  ;;  %1894 = vadd.xlane.f32.xlu2 %v1893_v8 }
0x12b9   :  { %v1896_v45 = vsel %vm309_vm8, %v2657_v7, 0.0 }
0x12ba   :  { %1897 = vadd.xlane.f32.xlu0 %v1896_v45 }
0x132b   :  { %v1895_v46 = vpop.xlane.xlu2 %1894 }
0x132c   :  { %2658 = vrcp.f32 %v1895_v46 }
0x132d   :  { %v1898_v47 = vpop.xlane.xlu0 %1897 }
0x132e   :  { %2660 = vrcp.f32 %v1898_v47 }
0x1332   :  { %v2659_v10 = vpop.eup %2658 }
0x1333   :  { %v1901_v48 = vmul.f32 %v2659_v10, %v2655_v6 }
0x1334   :  { %v2661_v60 = vpop.eup %2660 }
0x1335   :  { %v1902_v50 = vmul.f32 %v2661_v60, %v2657_v7  ;;  %2555 = vmatmul.msk.f32.vlgmr.msrb.gmra.mxu1 %vm309_vm8, %v1901_v48 }
0x1336   :  { %2567 = vmatpush.xpose.msk.msrb.mxu1 %vm309_vm8, %v2023_v49 }
0x1337   :  { %2556 = vmatmul.msk.f32.vlgmr.msrb.gmra.mxu3 %vm309_vm8, %v1902_v50 }
0x133d   :  { %2559 = vmatmul.msk.f32.vlgmr.msra.gmra.mxu1 %vm172_vm0, %v3492_v28 }
0x133e   :  { %2274 = vmatpush.msra.mxu1 %v3831_v54 }
0x133f   :  { %2563 = vmatmul.msk.f32.vlgmr.msra.gmra.mxu3 %vm172_vm0, %v3492_v28 }
0x1340   :  { %2275 = vmatpush.msra.mxu1 %v3832_v59 }
0x1342   :  { %2276 = vmatpush.msra.mxu1 %v3833_v51 }
0x1344   :  { %2277 = vmatpush.msra.mxu1 %v3834_v52 }
0x1345   :  { %2560 = vmatmul.msk.f32.gmra.mxu1 %vm172_vm0, %v3502_v0 }
0x1347   :  { %2564 = vmatmul.msk.f32.gmra.mxu3 %vm172_vm0, %v3502_v0  ;;  %v1751_v0 = vadd.f32 %v3633_v15, %v3635_v16 }
0x13b2   :  { %v1923_v55 = vpop.f32.mrf.mxu1 }
0x13b3   :  { %2557 = vmatmul.msk.f32.vlgmr.msra.gmra.mxu0 %vm309_vm8, %v1923_v55 }
0x13ba   :  { %v1946_v30 = vpop.f32.mrf.mxu3  ;;  %v1997_v56 = vpop.f32.mrf.mxu1 }
0x13bb   :  { %2558 = vmatmul.msk.f32.gmra.mxu0 %vm309_vm8, %v1946_v30 }
0x13c2   :  { %v2000_v28 = vpop.f32.mrf.mxu1  ;;  %v2043_v31 = vpop.f32.mrf.mxu3 }
0x13c3   :  { %2566 = vmatmul.msk.f32.vlgmr.msrb.gmra.mxu0 %vm309_vm8, %v1997_v56  ;;  %2568 = vmatmul.msk.f32.vlgmr.msrb.gmra.mxu1 %vm309_vm8, %v2000_v28 }
0x13c4   :  { %2145 = vmatpush.msra.mxu0 %v2043_v31 }
0x13c6   :  { %2194 = vmatpush.msrb.mxu0 %v3835_v58 }
0x13ca   :  { %v2046_v62 = vpop.f32.mrf.mxu3 }
0x13cb   :  { %2168 = vmatpush.msrb.mxu3 %v2046_v62 }
0x1430   :  { %v1972_v22 = vpop.f32.mrf.mxu0 }
0x1431   :  { %v1978_v20 = vadd.f32 %v1972_v22, %v1751_v0 }
0x1438   :  { %v1975_v3 = vpop.f32.mrf.mxu0 }
0x1439   :  { %v1979_v41 = vadd.f32 %v1975_v3, %v3637_v33 }
0x1440   :  { %v2072_v12 = vpop.f32.mrf.mxu0  ;;  %v2098_v35 = vpop.f32.mrf.mxu1 }
0x1441   :  { %v2101_v40 = vmul.f32 0.35355338, %v2072_v12  ;;  %v2102_v27 = vmul.f32 0.35355338, %v2098_v35 }
0x1443   :  { %v2104_v42 = vadd.f32 %v2102_v27, %v2993_v23  ;;  %v2103_v11 = vadd.f32 %v2101_v40, %v2993_v23 }
0x1445   :  { %v2108_v14 = vsel %vm309_vm8, %v2104_v42, -inf  ;;  %v2105_v36 = vsel %vm309_vm8, %v2103_v11, -inf }
0x1446   :  { %2109 = vmax.xlane.f32.xlu2 %v2108_v14  ;;  %2106 = vmax.xlane.f32.xlu1 %v2105_v36  ;;  %v3840_v36 = vld [vmem:[#allocation18_spill] sm:$0xff] }
0x14b9   :  { %v2110_v15 = vpop.xlane.xlu2 %2109  ;;  %v2107_v16 = vpop.xlane.xlu1 %2106 }
0x14ba   :  { %v2112_v34 = vsub.f32 %v2104_v42, %v2110_v15  ;;  %v2111_v26 = vsub.f32 %v2103_v11, %v2107_v16  ;;  %v3839_v42 = vld [vmem:[#allocation17_spill] sm:$0xff] }
0x14bc   :  { %v2115_v29 = vmul.f32 1.442695, %v2112_v34  ;;  %v2113_v33 = vmul.f32 1.442695, %v2111_v26 }
0x14be   :  { %2662 = vpow2.f32 %v2115_v29 }
0x14bf   :  { %2664 = vpow2.f32 %v2113_v33 }
0x14c4   :  { %v2663_v19 = vpop.eup %2662 }
0x14c5   :  { %v2665_v21 = vpop.eup %2664  ;;  %v2120_v38 = vsel %vm309_vm8, %v2663_v19, 0.0 }
0x14c6   :  { %2121 = vadd.xlane.f32.xlu1 %v2120_v38  ;;  %v2117_v23 = vsel %vm309_vm8, %v2665_v21, 0.0 }
0x14c7   :  { %2118 = vadd.xlane.f32.xlu0 %v2117_v23 }
0x1539   :  { %v2122_v5 = vpop.xlane.xlu1 %2121 }
0x153a   :  { %v2119_v43 = vpop.xlane.xlu0 %2118  ;;  %2666 = vrcp.f32 %v2122_v5 }
0x153b   :  { %2668 = vrcp.f32 %v2119_v43 }
0x1540   :  { %v2667_v25 = vpop.eup %2666 }
0x1541   :  { %v2669_v39 = vpop.eup %2668  ;;  %v2126_v32 = vmul.f32 %v2667_v25, %v2663_v19 }
0x1542   :  { %v2125_v24 = vmul.f32 %v2669_v39, %v2665_v21  ;;  %v3841_v21 = vld [vmem:[#allocation19_spill] sm:$0xff] }
0x1543   :  { %2570 = vmatmul.msk.f32.vlgmr.msrb.gmra.mxu3 %vm309_vm8, %v2126_v32 }
0x1544   :  { %2569 = vmatmul.msk.f32.vlgmr.msra.gmra.mxu0 %vm309_vm8, %v2125_v24  ;;  %v3842_v24 = vld [vmem:[#allocation20_spill] sm:$0xff] }
0x15c1   :  { %v2147_v57 = vpop.f32.mrf.mxu0 }
0x15c2   :  { %2571 = vmatmul.msk.f32.vlgmr.msrb.gmra.mxu0 %vm309_vm8, %v2147_v57 }
0x15c6   :  { %v2170_v9 = vpop.f32.mrf.mxu3 }
0x15ca   :  { %2572 = vmatmul.msk.f32.gmra.mxu0 %vm309_vm8, %v2170_v9 }
0x163f   :  { %v2196_v44 = vpop.f32.mrf.mxu0 }
0x1640   :  { %v2202_v18 = vadd.f32 %v2196_v44, %v1978_v20 }
0x1642   :  { %v2204_v2 = vadd.f32 %v2202_v18, %v3836_v17 }
0x1644   :  { %v3689_v61 = vadd.f32 %v3837_v37, %v2204_v2 }
0x1646   :  { %v2208_v1 = vsel %vm172_vm0, %v3689_v61, 0.0 }
0x1647   :  { %2209 = vadd.xlane.f32.xlu2 %v2208_v1  ;;  %v2199_v63 = vpop.f32.mrf.mxu0 }
0x1648   :  { %v2203_v53 = vadd.f32 %v2199_v63, %v1979_v41 }
0x164a   :  { %v2205_v6 = vadd.f32 %v2203_v53, %v3838_v4 }
0x164c   :  { %v3695_v8 = vadd.f32 %v3837_v37, %v2205_v6 }
0x164e   :  { %v2211_v7 = vsel %vm172_vm0, %v3695_v8, 0.0 }
0x164f   :  { %2212 = vadd.xlane.f32.xlu0 %v2211_v7 }
0x16ba   :  { %v2210_v45 = vpop.xlane.xlu2 %2209 }
0x16bb   :  { %v2214_v46 = vmul.f32 %v2210_v45, %v2834_v13 }
0x16bd   :  { %v2216_v47 = vsub.f32 %v3689_v61, %v2214_v46  ;;  %v96_v46 = vld [vmem:[%s3770_s17 + $0x18] sm:$0xff] }
0x16be   :  { %2389 = vmatpush.msra.mxu3 %v96_v46 }
0x16bf   :  { %v2218_v10 = vmul.f32 %v2216_v47, %v2216_v47 }
0x16c1   :  { %v2220_v48 = vsel %vm172_vm0, %v2218_v10, 0.0  ;;  %v94_v10 = vld [vmem:[%s3770_s17 + $0x8] sm:$0xff] }
0x16c2   :  { %2221 = vadd.xlane.f32.xlu1 %v2220_v48  ;;  %v2213_v60 = vpop.xlane.xlu0 %2212  ;;  %v93_v48 = vld [vmem:[%s3770_s17] sm:$0xff] }
0x16c3   :  { %v2215_v49 = vmul.f32 %v2213_v60, %v2834_v13 }
0x16c5   :  { %v2217_v50 = vsub.f32 %v3695_v8, %v2215_v49 }
0x16c7   :  { %v2219_v54 = vmul.f32 %v2217_v50, %v2217_v50 }
0x16c9   :  { %v2223_v59 = vsel %vm172_vm0, %v2219_v54, 0.0 }
0x16ca   :  { %2224 = vadd.xlane.f32.xlu2 %v2223_v59 }
0x1735   :  { %v2222_v51 = vpop.xlane.xlu1 %2221 }
0x1736   :  { %v2226_v52 = vmul.f32 %v2222_v51, %v2834_v13 }
0x1738   :  { %v2228_v55 = vadd.f32 1e-05, %v2226_v52 }
0x173a   :  { %2670 = vrsqrt.f32 %v2228_v55  ;;  %vm2236_vm8 = vweird.f32 %v2228_v55 }
0x173d   :  { %v2225_v30 = vpop.xlane.xlu2 %2224 }
0x173e   :  { %v2227_v56 = vmul.f32 %v2225_v30, %v2834_v13 }
0x1740   :  { %v2671_v28 = vpop.eup %2670  ;;  %v2229_v31 = vadd.f32 1e-05, %v2227_v56 }
0x1741   :  { %v2231_v58 = vmul.f32 %v2671_v28, %v2228_v55  ;;  %vm2237_vm7 = vweird.f32 %v2671_v28 }
0x1742   :  { %2672 = vrsqrt.f32 %v2229_v31  ;;  %vm2238_vm9 = vmor %vm2236_vm8, %vm2237_vm7  ;;  %vm2246_vm11 = vweird.f32 %v2229_v31 }
0x1743   :  { %v2232_v62 = vmul.f32 %v2671_v28, %v2231_v58 }
0x1745   :  { %v2233_v0 = vmul.f32 0.5, %v2232_v62 }
0x1747   :  { %v2234_v22 = vsub.f32 1.5, %v2233_v0  ;;  %v2589_v0 = vld [vmem:[%s3768_s15] ss:$0 sm:$0xff] }
0x1748   :  { %v2673_v20 = vpop.eup %2672 }
0x1749   :  { %v2235_v3 = vmul.f32 %v2671_v28, %v2234_v22  ;;  %v2241_v41 = vmul.f32 %v2673_v20, %v2229_v31  ;;  %vm2247_vm10 = vweird.f32 %v2673_v20 }
0x174a   :  { %vm2248_vm12 = vmor %vm2246_vm11, %vm2247_vm10 }
0x174b   :  { %v2239_v12 = vsel %vm2238_vm9, %v2671_v28, %v2235_v3  ;;  %v2242_v35 = vmul.f32 %v2673_v20, %v2241_v41  ;;  %v2590_v3 = vld [vmem:[%s3769_s16] ss:$0 sm:$0xff]  ;;  %s2714_s16 = smov [#allocation2]  }
0x174c   :  { %v2250_v40 = vmul.f32 %v2239_v12, %v2216_v47  ;;  %v95_v47 = vld [vmem:[%s3770_s17 + $0x10] sm:$0xff]  ;;  %s2406_s3 = sshll.u32 %s2714_s16, 4  ;;  %s2407_s3 = int_to_ptr.vmem [resolvable:$true] %s2406_s3 }
0x174d   :  { %v2243_v27 = vmul.f32 0.5, %v2242_v35  ;;  %2390 = vmatpush.msra.mxu3 %v95_v47 }
0x174e   :  { %v2252_v11 = vmul.f32 %v3839_v42, %v2250_v40 }
0x174f   :  { %v2244_v14 = vsub.f32 1.5, %v2243_v27  ;;  %2391 = vmatpush.msra.mxu3 %v94_v10 }
0x1750   :  { %v2254_v15 = vadd.f32 %v3840_v36, %v2252_v11 }
0x1751   :  { %v2245_v16 = vmul.f32 %v2673_v20, %v2244_v14  ;;  %2392 = vmatpush.msra.mxu3 %v93_v48 }
0x1752   :  { %2573 = vmatmul.msk.f32.vlgmr.msra.gmra.mxu1 %vm172_vm0, %v2254_v15  ;;  %v2591_v15 = vld [vmem:[%s3771_s18] ss:$0 sm:$0xff] }
0x1753   :  { %v2249_v34 = vsel %vm2248_vm12, %v2673_v20, %v2245_v16 }
0x1754   :  { %v2251_v26 = vmul.f32 %v2249_v34, %v2217_v50 }
0x1756   :  { %v2253_v29 = vmul.f32 %v3839_v42, %v2251_v26 }
0x1758   :  { %v2255_v33 = vadd.f32 %v3840_v36, %v2253_v29 }
0x175a   :  { %2574 = vmatmul.msk.f32.gmra.mxu1 %vm172_vm0, %v2255_v33 }
0x17cf   :  { %v2279_v19 = vpop.f32.mrf.mxu1 }
0x17d0   :  { %v2280_v38 = vadd.f32 %v3841_v21, %v2279_v19 }
0x17d2   :  { %v2285_v23 = vmax.f32 %v2280_v38, 0.0 }
0x17d4   :  { %2303 = vmatmul.f32.vlgmr.msra.gmra.mxu2 %v2285_v23 }
0x17d7   :  { %v2282_v5 = vpop.f32.mrf.mxu1 }
0x17d8   :  { %v2283_v43 = vadd.f32 %v3841_v21, %v2282_v5 }
0x17da   :  { %v2286_v25 = vmax.f32 %v2283_v43, 0.0 }
0x17dc   :  { %2306 = vmatmul.f32.gmra.mxu2 %v2286_v25 }
0x1857   :  { %v2304_v39 = vpop.f32.mrf.mxu2 }
0x1858   :  { %v2310_v32 = vadd.f32 %v2304_v39, %v3689_v61 }
0x185a   :  { %v2312_v57 = vadd.f32 %v3842_v24, %v2310_v32 }
0x185c   :  { %v2314_v9 = vsel %vm172_vm0, %v2312_v57, 0.0 }
0x185d   :  { %2315 = vadd.xlane.f32.xlu0 %v2314_v9 }
0x185f   :  { %v2307_v44 = vpop.f32.mrf.mxu2 }
0x1860   :  { %v2311_v18 = vadd.f32 %v2307_v44, %v3695_v8 }
0x1862   :  { %v2313_v17 = vadd.f32 %v3842_v24, %v2311_v18 }
0x1864   :  { %v2317_v2 = vsel %vm172_vm0, %v2313_v17, 0.0 }
0x1865   :  { %2318 = vadd.xlane.f32.xlu1 %v2317_v2 }
0x18d0   :  { %v2316_v37 = vpop.xlane.xlu0 %2315 }
0x18d1   :  { %v2320_v1 = vmul.f32 %v2316_v37, %v2834_v13 }
0x18d3   :  { %v2322_v63 = vsub.f32 %v2312_v57, %v2320_v1 }
0x18d5   :  { %v2324_v53 = vmul.f32 %v2322_v63, %v2322_v63 }
0x18d7   :  { %v2326_v61 = vsel %vm172_vm0, %v2324_v53, 0.0 }
0x18d8   :  { %v2319_v4 = vpop.xlane.xlu1 %2318  ;;  %2327 = vadd.xlane.f32.xlu2 %v2326_v61 }
0x18d9   :  { %v2321_v6 = vmul.f32 %v2319_v4, %v2834_v13 }
0x18db   :  { %v2323_v7 = vsub.f32 %v2313_v17, %v2321_v6 }
0x18dd   :  { %v2325_v45 = vmul.f32 %v2323_v7, %v2323_v7 }
0x18df   :  { %v2329_v8 = vsel %vm172_vm0, %v2325_v45, 0.0 }
0x18e0   :  { %2330 = vadd.xlane.f32.xlu0 %v2329_v8 }
0x194b   :  { %v2328_v60 = vpop.xlane.xlu2 %2327 }
0x194c   :  { %v2332_v49 = vmul.f32 %v2328_v60, %v2834_v13 }
0x194e   :  { %v2334_v50 = vadd.f32 1e-05, %v2332_v49 }
0x1950   :  { %2674 = vrsqrt.f32 %v2334_v50  ;;  %vm2342_vm14 = vweird.f32 %v2334_v50 }
0x1953   :  { %v2331_v54 = vpop.xlane.xlu0 %2330 }
0x1954   :  { %v2333_v59 = vmul.f32 %v2331_v54, %v2834_v13 }
0x1956   :  { %v2675_v51 = vpop.eup %2674  ;;  %v2335_v52 = vadd.f32 1e-05, %v2333_v59 }
0x1957   :  { %v2337_v55 = vmul.f32 %v2675_v51, %v2334_v50  ;;  %vm2343_vm13 = vweird.f32 %v2675_v51 }
0x1958   :  { %2676 = vrsqrt.f32 %v2335_v52  ;;  %vm2344_vm15 = vmor %vm2342_vm14, %vm2343_vm13  ;;  %vm2352_vm2 = vweird.f32 %v2335_v52 }
0x1959   :  { %v2338_v30 = vmul.f32 %v2675_v51, %v2337_v55 }
0x195b   :  { %v2339_v56 = vmul.f32 0.5, %v2338_v30 }
0x195d   :  { %v2340_v28 = vsub.f32 1.5, %v2339_v56 }
0x195e   :  { %v2677_v31 = vpop.eup %2676 }
0x195f   :  { %v2341_v58 = vmul.f32 %v2675_v51, %v2340_v28  ;;  %v2347_v62 = vmul.f32 %v2677_v31, %v2335_v52  ;;  %vm2353_vm1 = vweird.f32 %v2677_v31 }
0x1960   :  { %vm2354_vm3 = vmor %vm2352_vm2, %vm2353_vm1 }
0x1961   :  { %v2345_v22 = vsel %vm2344_vm15, %v2675_v51, %v2341_v58  ;;  %v2348_v20 = vmul.f32 %v2677_v31, %v2347_v62 }
0x1962   :  { %v2356_v13 = vmul.f32 %v2345_v22, %v2322_v63 }
0x1963   :  { %v2349_v41 = vmul.f32 0.5, %v2348_v20 }
0x1964   :  { %v2361_v12 = vmul.f32 %v2589_v0, %v2356_v13 }
0x1965   :  { %v2350_v35 = vsub.f32 1.5, %v2349_v41 }
0x1966   :  { %v2366_v40 = vadd.f32 %v2590_v3, %v2361_v12 }
0x1967   :  { %v2351_v27 = vmul.f32 %v2677_v31, %v2350_v35 }
0x1968   :  { %2575 = vmatmul.msk.f32.vlgmr.msra.gmra.mxu3 %vm172_vm0, %v2366_v40 }
0x1969   :  { %v2355_v42 = vsel %vm2354_vm3, %v2677_v31, %v2351_v27 }
0x196a   :  { %v2357_v11 = vmul.f32 %v2355_v42, %v2323_v7 }
0x196c   :  { %v2362_v14 = vmul.f32 %v2589_v0, %v2357_v11 }
0x196e   :  { %v2367_v36 = vadd.f32 %v2590_v3, %v2362_v14 }
0x1970   :  { %2576 = vmatmul.msk.f32.gmra.mxu3 %vm172_vm0, %v2367_v36 }
0x19eb   :  { %v2394_v16 = vpop.f32.mrf.mxu3 }
0x19ec   :  { %v2395_v34 = vadd.f32 %v2591_v15, %v2394_v16 }
0x19ee   :  { %2400 = vst [vmem:[#allocation2] sm:$0xff] %v2395_v34 }
0x19f3   :  { %v2397_v26 = vpop.f32.mrf.mxu3 }
0x19f4   :  { %v2398_v29 = vadd.f32 %v2591_v15, %v2397_v26 }
0x19f6   :  { %2401 = vst [vmem:[#allocation2 + $0x8] sm:$0xff] %v2398_v29 }
0x19f7   :  { %2414 = dma.vmem_to_hbm [thread:$0]  %s2407_s3, 256, %s2409_s11, [#allocation3], %s2715_s28, %s2715_s28, %s2716_s29  }
0x19f8   :  { %2710 = dma.done.wait [#allocation3], 256  }
0x19f9   :  { %2711 = vsyncadd [#allocation3], 4294967040 }
0x19fa   :  { %2419 = vsyncpa [#allocation3], 1 }

</bundles_post_ra>
